<compile_context>
chip_gen: v5e
topology: v5e:2x2
jax: 0.10.0
libtpu: 0.0.40
codegen_flags: <defaults>
</compile_context>

<pallas_src>
import jax
import jax.numpy as jnp
from jax.experimental import pallas as pl
from jax.experimental.pallas import tpu as pltpu


def toy_kernel(x_ref, w1q_ref, w1s_ref, b1_ref, w2_ref, b2_ref, o_ref):
    # x_ref:   (tm, 3072) f32     w1q_ref: (3072, 128) int8   w1s_ref: (1, 128) f32
    # b1_ref:  (1, 128)   f32     w2_ref:  (128, 128)  f32    b2_ref:  (1, 128) f32
    # o_ref:   (tm, 128)  f32
    x = x_ref[...].astype(jnp.bfloat16)                 # bf16 LHS for the MXU
    w1 = w1q_ref[...].astype(jnp.bfloat16)              # int8 -> bf16 (values in [-127,127], exact)

    # layer 1: f32 accumulate, then per-column dequant scale + bias (norm folded in)
    acc = jnp.dot(x, w1, preferred_element_type=jnp.float32)      # (tm, 128)
    h = acc * w1s_ref[...] + b1_ref[...]
    h = jnp.maximum(h, 0.0)                                       # lane-dense (128)

    # layer 2: tiny (128x128); padded K rows of w2 are zero, padded N cols get
    # bias -1e30 so they vanish in the softmax.
    logits = jnp.dot(h, w2_ref[...], preferred_element_type=jnp.float32) + b2_ref[...]

    # numerically stable softmax over the full lane-dense 128-wide tile;
    # exact divide (kernel is DMA-bound, approx reciprocal saves nothing and
    # breaks the sum-to-1 property).
    m = jnp.max(logits, axis=1, keepdims=True)
    e = jnp.exp(logits - m)                                       # padded lanes -> exactly 0
    o_ref[...] = e / jnp.sum(e, axis=1, keepdims=True)


def _cost_estimate(B):
    flops = 2 * B * 3072 * 128 + 2 * B * 128 * 128
    bytes_accessed = (3072 * 128          # w1 int8
                      + 3 * 128 * 4       # scale, b1, b2
                      + 128 * 128 * 4     # w2
                      + B * 3072 * 4      # x
                      + B * 128 * 4)      # padded output
    return pl.CostEstimate(flops=flops,
                           transcendentals=B * 128,
                           bytes_accessed=bytes_accessed)


def toy_model_forward(x_nchw, prepared, *, tm=128):
    """x_nchw: (B, 3, 32, 32) float32. Returns (B, 10) softmax probs."""
    B = x_nchw.shape[0]
    # torch: x.reshape(-1, 3, 1024) ... .reshape(-1, 3072) — row-major, same as jnp
    x2d = x_nchw.reshape(B, 3072).astype(jnp.float32)
    args = (x2d, prepared["w1q"], prepared["w1s"], prepared["b1"],
            prepared["w2"], prepared["b2"])
    cost = _cost_estimate(B)

    use_grid = (B % tm == 0) and (B >= 2 * tm)
    if not use_grid:
        # Single-block, gridless call: whole problem (<1 MiB) lives in VMEM.
        vmem = pl.BlockSpec(memory_space=pltpu.MemorySpace.VMEM)
        out_pad = pl.pallas_call(
            toy_kernel,
            out_shape=jax.ShapeDtypeStruct((B, 128), jnp.float32),
            in_specs=[vmem] * 6,
            out_specs=vmem,
            cost_estimate=cost,
        )(*args)
    else:
        # Batch grid: weights use constant index_maps (DMA'd once, VMEM-resident
        # across all grid steps); only the x tile streams.  "parallel" lets v7x
        # shard the M axis across its two TensorCores.
        out_pad = pl.pallas_call(
            toy_kernel,
            out_shape=jax.ShapeDtypeStruct((B, 128), jnp.float32),
            grid=(B // tm,),
            in_specs=[
                pl.BlockSpec((tm, 3072), lambda i: (i, 0)),
                pl.BlockSpec((3072, 128), lambda i: (0, 0)),
                pl.BlockSpec((1, 128), lambda i: (0, 0)),
                pl.BlockSpec((1, 128), lambda i: (0, 0)),
                pl.BlockSpec((128, 128), lambda i: (0, 0)),
                pl.BlockSpec((1, 128), lambda i: (0, 0)),
            ],
            out_specs=pl.BlockSpec((tm, 128), lambda i: (i, 0)),
            compiler_params=pltpu.CompilerParams(
                dimension_semantics=("parallel",)),
            cost_estimate=cost,
        )(*args)

    # drop the padded (exactly-zero-probability) class lanes
    return out_pad[:, :10]


def prepare_params(params):
    """One-time folding / padding / quantization of parameters (off the hot path)."""
    mean = params["mean"].astype(jnp.float32)          # (3,)
    std = params["std"].astype(jnp.float32)            # (3,)
    # channel-major blocks of 1024, matching the NCHW row-major flatten
    inv_std_vec = jnp.repeat(1.0 / std, 1024)          # (3072,)
    mean_vec = jnp.repeat(mean, 1024)                  # (3072,)

    w1 = params["w1"].astype(jnp.float32)              # (3072, 100) == torch net1.weight.T
    b1 = params["b1"].astype(jnp.float32)              # (100,)
    w2 = params["w2"].astype(jnp.float32)              # (100, 10)   == torch net2.weight.T
    b2 = params["b2"].astype(jnp.float32)              # (10,)

    # fold (x - mean)/std into layer 1:
    #   ((x - mean)/std) @ w1 + b1 == x @ (w1 * (1/std)[:,None]) + (b1 - (mean/std) @ w1)
    w1_fold = w1 * inv_std_vec[:, None]                # (3072, 100)
    b1_fold = b1 - (mean_vec * inv_std_vec) @ w1       # (100,)

    # pad hidden dim 100 -> 128 (lane-dense h), classes 10 -> 128 (lane-dense store);
    # padded class lanes get a huge-negative bias so softmax mass there is exactly 0.
    w1_pad = jnp.zeros((3072, 128), jnp.float32).at[:, :100].set(w1_fold)
    b1_pad = jnp.zeros((1, 128), jnp.float32).at[:, :100].set(b1_fold)
    w2_pad = jnp.zeros((128, 128), jnp.float32).at[:100, :10].set(w2)
    b2_pad = jnp.full((1, 128), -1e30, jnp.float32).at[:, :10].set(b2)

    # per-column symmetric int8 quantization of the folded w1 (dominant HBM DMA);
    # scale is applied in-kernel AFTER the f32 accumulate.
    col_max = jnp.max(jnp.abs(w1_pad), axis=0)                         # (128,)
    scale = jnp.where(col_max > 0.0, col_max / 127.0, 1.0)             # avoid 0/0 on pad cols
    w1_q = jnp.clip(jnp.round(w1_pad / scale[None, :]), -127.0, 127.0).astype(jnp.int8)

    return {
        "w1q": w1_q,                                   # (3072, 128) int8
        "w1s": scale.reshape(1, 128).astype(jnp.float32),
        "b1": b1_pad,                                  # biases stay f32
        "w2": w2_pad,                                  # tiny; keep f32
        "b2": b2_pad,
    }


def init_params(key):
    """Deterministic init matching the torch module's parameter shapes."""
    k1, k2, k3, k4 = jax.random.split(key, 4)
    # torch nn.Linear init: U(-1/sqrt(in), 1/sqrt(in))
    lim1 = 1.0 / jnp.sqrt(3072.0)
    lim2 = 1.0 / jnp.sqrt(100.0)
    return {
        "w1": jax.random.uniform(k1, (3072, 100), jnp.float32, -lim1, lim1),
        "b1": jax.random.uniform(k2, (100,), jnp.float32, -lim1, lim1),
        "w2": jax.random.uniform(k3, (100, 10), jnp.float32, -lim2, lim2),
        "b2": jax.random.uniform(k4, (10,), jnp.float32, -lim2, lim2),
        "mean": jnp.array([125.3, 123.0, 113.9], dtype=jnp.float32),
        "std": jnp.array([63.0, 62.1, 66.7], dtype=jnp.float32),
    }


def toy_model_reference(x_nchw, params):
    """Pure-JAX f32 reference mirroring the torch forward exactly."""
    B = x_nchw.shape[0]
    x = x_nchw.reshape(B, 3, 1024)
    x = (x - params["mean"][None, :, None]) / params["std"][None, :, None]
    x = x.reshape(B, 3072)
    h = jnp.maximum(x @ params["w1"] + params["b1"], 0.0)
    logits = h @ params["w2"] + params["b2"]
    return jax.nn.softmax(logits, axis=1)


if __name__ == "__main__":
    key = jax.random.PRNGKey(0)
    pkey, xkey, xkey_big = jax.random.split(key, 3)
    raw_params = init_params(pkey)
    prepared = prepare_params(raw_params)

    # Primary small-shape run — CIFAR-like NCHW input: batch=2, 3x32x32 (=> 3072 features)
    x = jax.random.uniform(xkey, (2, 3, 32, 32), jnp.float32, 0.0, 255.0)
    out = jax.block_until_ready(toy_model_forward(x, prepared))
    ref = toy_model_reference(x, raw_params)
    assert out.shape == (2, 10)
    assert jnp.allclose(jnp.sum(out, axis=1), 1.0, atol=1e-3)       # exact divide -> ~1
    assert jnp.allclose(out, ref, atol=5e-2)                        # bf16 x + int8 w1

    # Batched (grid) path sanity check: weights loaded once, streamed x tiles,
    # M axis parallel (sharded across v7x's two TensorCores).
    xb = jax.random.uniform(xkey_big, (256, 3, 32, 32), jnp.float32, 0.0, 255.0)
    outb = jax.block_until_ready(toy_model_forward(xb, prepared, tm=128))
    refb = toy_model_reference(xb, raw_params)
    assert outb.shape == (256, 10)
    assert jnp.allclose(jnp.sum(outb, axis=1), 1.0, atol=1e-3)
    assert jnp.allclose(outb, refb, atol=5e-2)

    print("KERNEL_OK")
</pallas_src>

<mosaic_0001>
module attributes {stable_mosaic.version = 11 : i64} {
  func.func @toy_kernel(%arg0: memref<2x3072xf32, #tpu.memory_space<vmem>>, %arg1: memref<3072x128xi8, #tpu.memory_space<vmem>>, %arg2: memref<1x128xf32, #tpu.memory_space<vmem>>, %arg3: memref<1x128xf32, #tpu.memory_space<vmem>>, %arg4: memref<128x128xf32, #tpu.memory_space<vmem>>, %arg5: memref<1x128xf32, #tpu.memory_space<vmem>>, %arg6: memref<2x128xf32, #tpu.memory_space<vmem>>) attributes {dimension_semantics = [], scalar_prefetch = 0 : i64, scratch_operands = 0 : i64, tpu.core_type = #tpu.core_type<tc>} {
    %c0 = arith.constant 0 : index
    %c0_0 = arith.constant 0 : index
    %0 = vector.load %arg0[%c0, %c0_0] : memref<2x3072xf32, #tpu.memory_space<vmem>>, vector<2x3072xf32>
    %1 = arith.truncf %0 : vector<2x3072xf32> to vector<2x3072xbf16>
    %c0_1 = arith.constant 0 : index
    %c0_2 = arith.constant 0 : index
    %2 = vector.load %arg1[%c0_1, %c0_2] : memref<3072x128xi8, #tpu.memory_space<vmem>>, vector<3072x128xi8>
    %3 = arith.sitofp %2 : vector<3072x128xi8> to vector<3072x128xbf16>
    %cst = arith.constant dense<0.000000e+00> : vector<2x128xf32>
    %4 = tpu.matmul %1, %3, %cst {dimension_numbers = #tpu.dot_dimension_numbers<[1], [0], [0], [1], [0, 0, 1, 1], [], []>} : vector<2x3072xbf16>, vector<3072x128xbf16>, vector<2x128xf32> -> vector<2x128xf32>
    %c0_3 = arith.constant 0 : index
    %c0_4 = arith.constant 0 : index
    %5 = vector.load %arg2[%c0_3, %c0_4] : memref<1x128xf32, #tpu.memory_space<vmem>>, vector<1x128xf32>
    %6 = vector.broadcast %5 : vector<1x128xf32> to vector<2x128xf32>
    %7 = arith.mulf %4, %6 : vector<2x128xf32>
    %c0_5 = arith.constant 0 : index
    %c0_6 = arith.constant 0 : index
    %8 = vector.load %arg3[%c0_5, %c0_6] : memref<1x128xf32, #tpu.memory_space<vmem>>, vector<1x128xf32>
    %9 = vector.broadcast %8 : vector<1x128xf32> to vector<2x128xf32>
    %10 = arith.addf %7, %9 : vector<2x128xf32>
    %cst_7 = arith.constant 0.000000e+00 : f32
    %11 = vector.broadcast %cst_7 : f32 to vector<2x128xf32>
    %12 = arith.maximumf %10, %11 : vector<2x128xf32>
    %c0_8 = arith.constant 0 : index
    %c0_9 = arith.constant 0 : index
    %13 = vector.load %arg4[%c0_8, %c0_9] : memref<128x128xf32, #tpu.memory_space<vmem>>, vector<128x128xf32>
    %cst_10 = arith.constant dense<0.000000e+00> : vector<2x128xf32>
    %14 = tpu.matmul %12, %13, %cst_10 {dimension_numbers = #tpu.dot_dimension_numbers<[1], [0], [0], [1], [0, 0, 1, 1], [], []>} : vector<2x128xf32>, vector<128x128xf32>, vector<2x128xf32> -> vector<2x128xf32>
    %c0_11 = arith.constant 0 : index
    %c0_12 = arith.constant 0 : index
    %15 = vector.load %arg5[%c0_11, %c0_12] : memref<1x128xf32, #tpu.memory_space<vmem>>, vector<1x128xf32>
    %16 = vector.broadcast %15 : vector<1x128xf32> to vector<2x128xf32>
    %17 = arith.addf %14, %16 : vector<2x128xf32>
    %cst_13 = arith.constant dense<0xFF800000> : vector<2xf32>
    %18 = vector.multi_reduction <maximumf>, %17, %cst_13 [1] : vector<2x128xf32> to vector<2xf32>
    %19 = vector.shape_cast %18 : vector<2xf32> to vector<2x1xf32>
    %20 = vector.broadcast %19 : vector<2x1xf32> to vector<2x128xf32>
    %21 = arith.subf %17, %20 : vector<2x128xf32>
    %22 = math.exp %21 : vector<2x128xf32>
    %cst_14 = arith.constant dense<0.000000e+00> : vector<2xf32>
    %23 = vector.multi_reduction <add>, %22, %cst_14 [1] : vector<2x128xf32> to vector<2xf32>
    %24 = vector.shape_cast %23 : vector<2xf32> to vector<2x1xf32>
    %25 = vector.broadcast %24 : vector<2x1xf32> to vector<2x128xf32>
    %26 = arith.divf %22, %25 : vector<2x128xf32>
    %c0_15 = arith.constant 0 : index
    %c0_16 = arith.constant 0 : index
    %27 = vector.load %arg6[%c0_15, %c0_16] : memref<2x128xf32, #tpu.memory_space<vmem>>, vector<2x128xf32>
    tpu.vector_store %arg6[%c0_15, %c0_16], %26 {strides = array<i32>} : memref<2x128xf32, #tpu.memory_space<vmem>>, vector<2x128xf32>,
    return
  }
}

</mosaic_0001>

<bundles_post_ra>
// kernel: tpu_custom_call.1
= control target key start
LH: loop header
LB: loop body
LE: loop exit
PB: predicated region body
PF: predicated region fallthrough
CT: control target
= control target key end

     0   :  { %11 = vsyncpa [#allocation3], 0  ;;  %s1918_s0 = inlined_call_operand.hbm [shape: f32[2,3072], index: 0, kind: input, shape index: {}]   ;;  %s1919_s1 = inlined_call_operand.hbm [shape: s8[3072,128], index: 1, kind: input, shape index: {}]   ;;  %s1920_s2 = inlined_call_operand.vmem [shape: f32[1,128], index: 2, kind: input, shape index: {}]   ;;  %s1921_s3 = inlined_call_operand.vmem [shape: f32[1,128], index: 3, kind: input, shape index: {}]   ;;  %s1922_s4 = inlined_call_operand.hbm [shape: f32[128,128], index: 4, kind: input, shape index: {}]   ;;  %s1923_s5 = inlined_call_operand.vmem [shape: f32[1,128], index: 5, kind: input, shape index: {}]   ;;  %s1924_s6 = inlined_call_operand.hbm [shape: f32[2,128], index: 6, kind: output, shape index: {}]  }
   0x1   :  { %12 = vsyncpa [#allocation6], 0  ;;  %s29_s23 = sshll.u32 %s1919_s1, 4  ;;  %s30_s23 = int_to_ptr.hbm [resolvable:$true] %s29_s23 }
   0x2   :  { %13 = vsyncpa [#allocation4], 0  ;;  %s1738_s24 = smov [#allocation5]   ;;  %s19_s28 = sshll.u32 %s1918_s0, 4  ;;  %s20_s28 = int_to_ptr.hbm [resolvable:$true] %s19_s28 }
   0x3   :  { %s31_s25 = sshll.u32 %s1738_s24, 4  ;;  %s1739_s29 = smov 128   ;;  %s32_s25 = int_to_ptr.vmem [resolvable:$true] %s31_s25 }
   0x4   :  { %s1740_s30 = smov 8   ;;  %s1741_s7 = smov [#allocation2]  }
   0x5   :  { %37 = dma.hbm_to_vmem [thread:$0]  %s30_s23, 12288, %s32_s25, [#allocation6], %s1739_s29, %s1739_s29, %s1740_s30  }
   0x6   :  { %s21_s8 = sshll.u32 %s1741_s7, 4  ;;  %s46_s11 = sshll.u32 %s1922_s4, 4  ;;  %s22_s8 = int_to_ptr.vmem [resolvable:$true] %s21_s8  ;;  %s47_s11 = int_to_ptr.hbm [resolvable:$true] %s46_s11 }
   0x7   :  { %24 = dma.hbm_to_vmem [thread:$0]  %s20_s28, 768, %s22_s8, [#allocation3]  }
   0x8   :  { %s1742_s1 = smov [#allocation7]  }
   0x9   :  { %s48_s12 = sshll.u32 %s1742_s1, 4  ;;  %s49_s12 = int_to_ptr.vmem [resolvable:$true] %s48_s12 }
   0xa   :  { %54 = dma.hbm_to_vmem [thread:$0]  %s47_s11, 2048, %s49_s12, [#allocation6], %s1739_s29, %s1739_s29, %s1740_s30  }
   0xb   :  { %1732 = dma.done.wait [#allocation3], 768  }
   0xc   :  { %1733 = vsyncadd [#allocation3], 4294966528 }
   0xd   :  { %1734 = dma.done.wait [#allocation6], 14336  }
   0xe   :  { %1735 = vsyncadd [#allocation6], 4294952960  ;;  %v163_v0 = vld [vmem:[#allocation5 + $0x18] sm:$0xff]  ;;  %v162_v28 = vld [vmem:[#allocation5 + $0x10] sm:$0xff]  ;;  %vm1579_vm0 = vcmask 1041408   ;;  %s1612_s18 = sshll.u32 %s1924_s6, 4  ;;  %s1613_s18 = int_to_ptr.hbm [resolvable:$true] %s1612_s18 }
   0xf   :  { %v167_v1 = vld [vmem:[#allocation5 + $0x38] sm:$0xff]  ;;  %v270_v3 = vunpack.c.2.s8 %v163_v0  ;;  %v271_v4 = vunpack.c.3.s8 %v163_v0  ;;  %v268_v22 = vunpack.c.0.s8 %v163_v0  ;;  %v269_v23 = vunpack.c.1.s8 %v163_v0  ;;  %v166_v37 = vld [vmem:[#allocation5 + $0x30] sm:$0xff] }
  0x10   :  { %v171_v2 = vld [vmem:[#allocation5 + $0x58] sm:$0xff]  ;;  %v286_v5 = vunpack.c.2.s8 %v167_v1  ;;  %v287_v6 = vunpack.c.3.s8 %v167_v1  ;;  %v284_v26 = vunpack.c.0.s8 %v167_v1  ;;  %v285_v27 = vunpack.c.1.s8 %v167_v1  ;;  %v170_v42 = vld [vmem:[#allocation5 + $0x50] sm:$0xff] }
  0x11   :  { %v175_v7 = vld [vmem:[#allocation5 + $0x78] sm:$0xff]  ;;  %v302_v8 = vunpack.c.2.s8 %v171_v2  ;;  %v303_v9 = vunpack.c.3.s8 %v171_v2  ;;  %v654_v12 = vcvt.s32.f32 %v270_v3  ;;  %v655_v13 = vcvt.s32.f32 %v271_v4  ;;  %v174_v47 = vld [vmem:[#allocation5 + $0x70] sm:$0xff] }
  0x12   :  { %v318_v10 = vunpack.c.2.s8 %v175_v7  ;;  %v319_v11 = vunpack.c.3.s8 %v175_v7  ;;  %v670_v14 = vcvt.s32.f32 %v286_v5  ;;  %v671_v15 = vcvt.s32.f32 %v287_v6 }
  0x13   :  { %v686_v16 = vcvt.s32.f32 %v302_v8  ;;  %v687_v17 = vcvt.s32.f32 %v303_v9  ;;  %v1031_v20 = vpack.c.bf16 %v655_v13, %v654_v12  ;;  %v652_v29 = vcvt.s32.f32 %v268_v22  ;;  %v161_v8 = vld [vmem:[#allocation5 + $0x8] sm:$0xff] }
  0x14   :  { %v702_v18 = vcvt.s32.f32 %v318_v10  ;;  %v703_v19 = vcvt.s32.f32 %v319_v11  ;;  %v1039_v21 = vpack.c.bf16 %v671_v15, %v670_v14  ;;  %v653_v30 = vcvt.s32.f32 %v269_v23  ;;  %v169_v22 = vld [vmem:[#allocation5 + $0x48] sm:$0xff] }
  0x15   :  { %v1047_v24 = vpack.c.bf16 %v687_v17, %v686_v16  ;;  %1216 = vmatpush.bf16.msra.mxu0 %v1031_v20  ;;  %v300_v31 = vunpack.c.0.s8 %v171_v2  ;;  %v301_v32 = vunpack.c.1.s8 %v171_v2  ;;  %v668_v33 = vcvt.s32.f32 %v284_v26  ;;  %v165_v17 = vld [vmem:[#allocation5 + $0x28] sm:$0xff] }
  0x16   :  { %v1055_v25 = vpack.c.bf16 %v703_v19, %v702_v18  ;;  %1229 = vmatpush.bf16.msra.mxu1 %v1039_v21  ;;  %v669_v34 = vcvt.s32.f32 %v285_v27  ;;  %v316_v35 = vunpack.c.0.s8 %v175_v7  ;;  %v317_v36 = vunpack.c.1.s8 %v175_v7  ;;  %v173_v27 = vld [vmem:[#allocation5 + $0x68] sm:$0xff] }
  0x17   :  { %1242 = vmatpush.bf16.msra.mxu2 %v1047_v24  ;;  %v1030_v38 = vpack.c.bf16 %v653_v30, %v652_v29  ;;  %v684_v39 = vcvt.s32.f32 %v300_v31  ;;  %v685_v40 = vcvt.s32.f32 %v301_v32  ;;  %v266_v41 = vunpack.c.2.s8 %v162_v28 }
  0x18   :  { %1255 = vmatpush.bf16.msra.mxu3 %v1055_v25  ;;  %v1038_v43 = vpack.c.bf16 %v669_v34, %v668_v33  ;;  %v700_v44 = vcvt.s32.f32 %v316_v35  ;;  %v701_v45 = vcvt.s32.f32 %v317_v36  ;;  %v267_v46 = vunpack.c.3.s8 %v162_v28 }
  0x19   :  { %1217 = vmatpush.bf16.msra.mxu0 %v1030_v38  ;;  %v1046_v48 = vpack.c.bf16 %v685_v40, %v684_v39  ;;  %v650_v49 = vcvt.s32.f32 %v266_v41  ;;  %v282_v50 = vunpack.c.2.s8 %v166_v37  ;;  %v283_v51 = vunpack.c.3.s8 %v166_v37 }
  0x1a   :  { %1230 = vmatpush.bf16.msra.mxu1 %v1038_v43  ;;  %v1054_v52 = vpack.c.bf16 %v701_v45, %v700_v44  ;;  %v651_v53 = vcvt.s32.f32 %v267_v46  ;;  %v298_v54 = vunpack.c.2.s8 %v170_v42  ;;  %v299_v55 = vunpack.c.3.s8 %v170_v42 }
  0x1b   :  { %1243 = vmatpush.bf16.msra.mxu2 %v1046_v48  ;;  %v666_v56 = vcvt.s32.f32 %v282_v50  ;;  %v667_v57 = vcvt.s32.f32 %v283_v51  ;;  %v314_v58 = vunpack.c.2.s8 %v174_v47  ;;  %v315_v59 = vunpack.c.3.s8 %v174_v47 }
  0x1c   :  { %1256 = vmatpush.bf16.msra.mxu3 %v1054_v52  ;;  %v1029_v60 = vpack.c.bf16 %v651_v53, %v650_v49  ;;  %v682_v61 = vcvt.s32.f32 %v298_v54  ;;  %v683_v62 = vcvt.s32.f32 %v299_v55  ;;  %v264_v63 = vunpack.c.0.s8 %v162_v28  ;;  %v160_v52 = vld [vmem:[#allocation5] sm:$0xff] }
  0x1d   :  { %v1037_v0 = vpack.c.bf16 %v667_v57, %v666_v56  ;;  %v698_v1 = vcvt.s32.f32 %v314_v58  ;;  %v699_v2 = vcvt.s32.f32 %v315_v59  ;;  %v265_v3 = vunpack.c.1.s8 %v162_v28 }
  0x1e   :  { %1218 = vmatpush.bf16.msra.mxu0 %v1029_v60  ;;  %v1045_v4 = vpack.c.bf16 %v683_v62, %v682_v61  ;;  %v648_v5 = vcvt.s32.f32 %v264_v63  ;;  %v280_v6 = vunpack.c.0.s8 %v166_v37  ;;  %v281_v7 = vunpack.c.1.s8 %v166_v37  ;;  %v164_v61 = vld [vmem:[#allocation5 + $0x20] sm:$0xff] }
  0x1f   :  { %1231 = vmatpush.bf16.msra.mxu1 %v1037_v0  ;;  %v1053_v9 = vpack.c.bf16 %v699_v2, %v698_v1  ;;  %v649_v10 = vcvt.s32.f32 %v265_v3  ;;  %v296_v11 = vunpack.c.0.s8 %v170_v42  ;;  %v297_v12 = vunpack.c.1.s8 %v170_v42  ;;  %v168_v2 = vld [vmem:[#allocation5 + $0x40] sm:$0xff] }
  0x20   :  { %1244 = vmatpush.bf16.msra.mxu2 %v1045_v4  ;;  %v664_v13 = vcvt.s32.f32 %v280_v6  ;;  %v665_v14 = vcvt.s32.f32 %v281_v7  ;;  %v312_v15 = vunpack.c.0.s8 %v174_v47  ;;  %v313_v16 = vunpack.c.1.s8 %v174_v47  ;;  %v172_v7 = vld [vmem:[#allocation5 + $0x60] sm:$0xff] }
  0x21   :  { %1257 = vmatpush.bf16.msra.mxu3 %v1053_v9  ;;  %v1028_v18 = vpack.c.bf16 %v649_v10, %v648_v5  ;;  %v680_v19 = vcvt.s32.f32 %v296_v11  ;;  %v681_v20 = vcvt.s32.f32 %v297_v12  ;;  %v262_v21 = vunpack.c.2.s8 %v161_v8 }
  0x22   :  { %v1036_v23 = vpack.c.bf16 %v665_v14, %v664_v13  ;;  %v696_v24 = vcvt.s32.f32 %v312_v15  ;;  %v697_v25 = vcvt.s32.f32 %v313_v16  ;;  %v263_v26 = vunpack.c.3.s8 %v161_v8 }
  0x23   :  { %1219 = vmatpush.bf16.msra.mxu0 %v1028_v18  ;;  %v1044_v28 = vpack.c.bf16 %v681_v20, %v680_v19  ;;  %v646_v29 = vcvt.s32.f32 %v262_v21  ;;  %v278_v30 = vunpack.c.2.s8 %v165_v17  ;;  %v279_v31 = vunpack.c.3.s8 %v165_v17 }
  0x24   :  { %1232 = vmatpush.bf16.msra.mxu1 %v1036_v23  ;;  %v1052_v32 = vpack.c.bf16 %v697_v25, %v696_v24  ;;  %v647_v33 = vcvt.s32.f32 %v263_v26  ;;  %v294_v34 = vunpack.c.2.s8 %v169_v22  ;;  %v295_v35 = vunpack.c.3.s8 %v169_v22 }
  0x25   :  { %1245 = vmatpush.bf16.msra.mxu2 %v1044_v28  ;;  %v662_v36 = vcvt.s32.f32 %v278_v30  ;;  %v663_v37 = vcvt.s32.f32 %v279_v31  ;;  %v310_v38 = vunpack.c.2.s8 %v173_v27  ;;  %v311_v39 = vunpack.c.3.s8 %v173_v27 }
  0x26   :  { %1258 = vmatpush.bf16.msra.mxu3 %v1052_v32  ;;  %v1027_v40 = vpack.c.bf16 %v647_v33, %v646_v29  ;;  %v678_v41 = vcvt.s32.f32 %v294_v34  ;;  %v679_v42 = vcvt.s32.f32 %v295_v35  ;;  %v260_v43 = vunpack.c.0.s8 %v161_v8  ;;  %v179_v33 = vld [vmem:[#allocation5 + $0x98] sm:$0xff] }
  0x27   :  { %v1035_v44 = vpack.c.bf16 %v663_v37, %v662_v36  ;;  %v694_v45 = vcvt.s32.f32 %v310_v38  ;;  %v695_v46 = vcvt.s32.f32 %v311_v39  ;;  %v261_v47 = vunpack.c.1.s8 %v161_v8  ;;  %v69_v8 = vld [vmem:[#allocation2] sm:$0xff] }
  0x28   :  { %1220 = vmatpush.bf16.msra.mxu0 %v1027_v40  ;;  %v1043_v48 = vpack.c.bf16 %v679_v42, %v678_v41  ;;  %v644_v49 = vcvt.s32.f32 %v260_v43  ;;  %v276_v50 = vunpack.c.0.s8 %v165_v17  ;;  %v277_v51 = vunpack.c.1.s8 %v165_v17  ;;  %81 = vst [vmem:[#allocation1] ss:$4 sm:$0xff] %v69_v8  ;;  %v183_v42 = vld [vmem:[#allocation5 + $0xb8] sm:$0xff] }
  0x29   :  { %1233 = vmatpush.bf16.msra.mxu1 %v1035_v44  ;;  %v1051_v53 = vpack.c.bf16 %v695_v46, %v694_v45  ;;  %v645_v54 = vcvt.s32.f32 %v261_v47  ;;  %v292_v55 = vunpack.c.0.s8 %v169_v22  ;;  %v293_v56 = vunpack.c.1.s8 %v169_v22  ;;  %v187_v47 = vld [vmem:[#allocation5 + $0xd8] sm:$0xff] }
  0x2a   :  { %1246 = vmatpush.bf16.msra.mxu2 %v1043_v48  ;;  %v660_v57 = vcvt.s32.f32 %v276_v50  ;;  %v661_v58 = vcvt.s32.f32 %v277_v51  ;;  %v308_v59 = vunpack.c.0.s8 %v173_v27  ;;  %v309_v60 = vunpack.c.1.s8 %v173_v27 }
  0x2b   :  { %1259 = vmatpush.bf16.msra.mxu3 %v1051_v53  ;;  %v1026_v62 = vpack.c.bf16 %v645_v54, %v644_v49  ;;  %v676_v63 = vcvt.s32.f32 %v292_v55  ;;  %v677_v0 = vcvt.s32.f32 %v293_v56  ;;  %v258_v1 = vunpack.c.2.s8 %v160_v52 }
  0x2c   :  { %v1034_v3 = vpack.c.bf16 %v661_v58, %v660_v57  ;;  %v692_v4 = vcvt.s32.f32 %v308_v59  ;;  %v693_v5 = vcvt.s32.f32 %v309_v60  ;;  %v259_v6 = vunpack.c.3.s8 %v160_v52 }
  0x2d   :  { %1221 = vmatpush.bf16.msra.mxu0 %v1026_v62  ;;  %v1042_v9 = vpack.c.bf16 %v677_v0, %v676_v63  ;;  %v642_v10 = vcvt.s32.f32 %v258_v1  ;;  %v274_v11 = vunpack.c.2.s8 %v164_v61  ;;  %v275_v12 = vunpack.c.3.s8 %v164_v61 }
  0x2e   :  { %1234 = vmatpush.bf16.msra.mxu1 %v1034_v3  ;;  %v1050_v13 = vpack.c.bf16 %v693_v5, %v692_v4  ;;  %v643_v14 = vcvt.s32.f32 %v259_v6  ;;  %v290_v15 = vunpack.c.2.s8 %v168_v2  ;;  %v291_v16 = vunpack.c.3.s8 %v168_v2  ;;  %v71_v4 = vld [vmem:[#allocation2 + $0x10] sm:$0xff] }
  0x2f   :  { %1247 = vmatpush.bf16.msra.mxu2 %v1042_v9  ;;  %v658_v17 = vcvt.s32.f32 %v274_v11  ;;  %v659_v18 = vcvt.s32.f32 %v275_v12  ;;  %v306_v19 = vunpack.c.2.s8 %v172_v7  ;;  %v307_v20 = vunpack.c.3.s8 %v172_v7  ;;  %v1788_v57 = vld.sshfl [vmem:[#allocation1 + $0x10] sm:$0xff pattern:$0x73625140]  ;;  %v1790_v62 = vld.sshfl [vmem:[#allocation1] sm:$0xff pattern:$0x73625140] }
  0x30   :  { %1260 = vmatpush.bf16.msra.mxu3 %v1050_v13  ;;  %v1025_v21 = vpack.c.bf16 %v643_v14, %v642_v10  ;;  %v674_v22 = vcvt.s32.f32 %v290_v15  ;;  %v675_v23 = vcvt.s32.f32 %v291_v16  ;;  %v256_v24 = vunpack.c.0.s8 %v160_v52  ;;  %v1792_v63 = vld.sshfl [vmem:[#allocation1 + $0x18] sm:$0xff pattern:$0x73625140]  ;;  %v1794_v5 = vld.sshfl [vmem:[#allocation1 + $0x8] sm:$0xff pattern:$0x73625140] }
  0x31   :  { %v1033_v25 = vpack.c.bf16 %v659_v18, %v658_v17  ;;  %v690_v26 = vcvt.s32.f32 %v306_v19  ;;  %v691_v27 = vcvt.s32.f32 %v307_v20  ;;  %v257_v28 = vunpack.c.1.s8 %v160_v52  ;;  %v191_v52 = vld [vmem:[#allocation5 + $0xf8] sm:$0xff]  ;;  %92 = vst [vmem:[#allocation1] ss:$4 sm:$0xff] %v71_v4  ;;  %v178_v18 = vld [vmem:[#allocation5 + $0x90] sm:$0xff] }
  0x32   :  { %1222 = vmatpush.bf16.msra.mxu0 %v1025_v21  ;;  %v1041_v29 = vpack.c.bf16 %v675_v23, %v674_v22  ;;  %v640_v30 = vcvt.s32.f32 %v256_v24  ;;  %v272_v31 = vunpack.c.0.s8 %v164_v61  ;;  %v273_v32 = vunpack.c.1.s8 %v164_v61 }
  0x33   :  { %1235 = vmatpush.bf16.msra.mxu1 %v1033_v25  ;;  %v1049_v34 = vpack.c.bf16 %v691_v27, %v690_v26  ;;  %v641_v35 = vcvt.s32.f32 %v257_v28  ;;  %v288_v36 = vunpack.c.0.s8 %v168_v2  ;;  %v289_v37 = vunpack.c.1.s8 %v168_v2  ;;  %v182_v27 = vld [vmem:[#allocation5 + $0xb0] sm:$0xff] }
  0x34   :  { %1248 = vmatpush.bf16.msra.mxu2 %v1041_v29  ;;  %v656_v38 = vcvt.s32.f32 %v272_v31  ;;  %v657_v39 = vcvt.s32.f32 %v273_v32  ;;  %v304_v40 = vunpack.c.0.s8 %v172_v7  ;;  %v305_v41 = vunpack.c.1.s8 %v172_v7  ;;  %v186_v32 = vld [vmem:[#allocation5 + $0xd0] sm:$0xff] }
  0x35   :  { %1261 = vmatpush.bf16.msra.mxu3 %v1049_v34  ;;  %v1024_v43 = vpack.c.bf16 %v641_v35, %v640_v30  ;;  %v672_v44 = vcvt.s32.f32 %v288_v36  ;;  %v673_v45 = vcvt.s32.f32 %v289_v37  ;;  %v334_v46 = vunpack.c.2.s8 %v179_v33  ;;  %v190_v37 = vld [vmem:[#allocation5 + $0xf0] sm:$0xff] }
  0x36   :  { %v1032_v48 = vpack.c.bf16 %v657_v39, %v656_v38  ;;  %v688_v49 = vcvt.s32.f32 %v304_v40  ;;  %v689_v50 = vcvt.s32.f32 %v305_v41  ;;  %v335_v51 = vunpack.c.3.s8 %v179_v33 }
  0x37   :  { %1223 = vmatpush.bf16.msra.mxu0 %v1024_v43  ;;  %v1040_v53 = vpack.c.bf16 %v673_v45, %v672_v44  ;;  %v718_v54 = vcvt.s32.f32 %v334_v46  ;;  %v350_v55 = vunpack.c.2.s8 %v183_v42  ;;  %v351_v56 = vunpack.c.3.s8 %v183_v42 }
  0x38   :  { %1236 = vmatpush.bf16.msra.mxu1 %v1032_v48  ;;  %v1048_v58 = vpack.c.bf16 %v689_v50, %v688_v49  ;;  %v719_v59 = vcvt.s32.f32 %v335_v51  ;;  %v366_v60 = vunpack.c.2.s8 %v187_v47  ;;  %v367_v61 = vunpack.c.3.s8 %v187_v47 }
  0x39   :  { %1249 = vmatpush.bf16.msra.mxu2 %v1040_v53  ;;  %v734_v0 = vcvt.s32.f32 %v350_v55  ;;  %v735_v1 = vcvt.s32.f32 %v351_v56  ;;  %v382_v2 = vunpack.c.2.s8 %v191_v52  ;;  %v383_v3 = vunpack.c.3.s8 %v191_v52 }
  0x3a   :  { %1262 = vmatpush.bf16.msra.mxu3 %v1048_v58  ;;  %v1063_v6 = vpack.c.bf16 %v719_v59, %v718_v54  ;;  %v750_v7 = vcvt.s32.f32 %v366_v60  ;;  %v751_v8 = vcvt.s32.f32 %v367_v61  ;;  %v332_v9 = vunpack.c.0.s8 %v179_v33  ;;  %v70_v54 = vld [vmem:[#allocation2 + $0x8] sm:$0xff] }
  0x3b   :  { %v1071_v10 = vpack.c.bf16 %v735_v1, %v734_v0  ;;  %v766_v11 = vcvt.s32.f32 %v382_v2  ;;  %v767_v12 = vcvt.s32.f32 %v383_v3  ;;  %v333_v13 = vunpack.c.1.s8 %v179_v33  ;;  %83 = vst [vmem:[#allocation1 + $0x20] ss:$4 sm:$0xff] %v70_v54  ;;  %v177_v2 = vld [vmem:[#allocation5 + $0x88] sm:$0xff] }
  0x3c   :  { %1268 = vmatpush.bf16.msrb.mxu0 %v1063_v6  ;;  %v1079_v14 = vpack.c.bf16 %v751_v8, %v750_v7  ;;  %v716_v15 = vcvt.s32.f32 %v332_v9  ;;  %v348_v16 = vunpack.c.0.s8 %v183_v42  ;;  %v349_v17 = vunpack.c.1.s8 %v183_v42 }
  0x3d   :  { %1281 = vmatpush.bf16.msrb.mxu1 %v1071_v10  ;;  %v1087_v19 = vpack.c.bf16 %v767_v12, %v766_v11  ;;  %v717_v20 = vcvt.s32.f32 %v333_v13  ;;  %v364_v21 = vunpack.c.0.s8 %v187_v47  ;;  %v365_v22 = vunpack.c.1.s8 %v187_v47  ;;  %v181_v12 = vld [vmem:[#allocation5 + $0xa8] sm:$0xff] }
  0x3e   :  { %1294 = vmatpush.bf16.msrb.mxu2 %v1079_v14  ;;  %v732_v23 = vcvt.s32.f32 %v348_v16  ;;  %v733_v24 = vcvt.s32.f32 %v349_v17  ;;  %v380_v25 = vunpack.c.0.s8 %v191_v52  ;;  %v381_v26 = vunpack.c.1.s8 %v191_v52  ;;  %v185_v17 = vld [vmem:[#allocation5 + $0xc8] sm:$0xff] }
  0x3f   :  { %1307 = vmatpush.bf16.msrb.mxu3 %v1087_v19  ;;  %v1062_v28 = vpack.c.bf16 %v717_v20, %v716_v15  ;;  %v748_v29 = vcvt.s32.f32 %v364_v21  ;;  %v749_v30 = vcvt.s32.f32 %v365_v22  ;;  %v330_v31 = vunpack.c.2.s8 %v178_v18  ;;  %v189_v22 = vld [vmem:[#allocation5 + $0xe8] sm:$0xff] }
  0x40   :  { %v1070_v33 = vpack.c.bf16 %v733_v24, %v732_v23  ;;  %v764_v34 = vcvt.s32.f32 %v380_v25  ;;  %v765_v35 = vcvt.s32.f32 %v381_v26  ;;  %v331_v36 = vunpack.c.3.s8 %v178_v18 }
  0x41   :  { %1269 = vmatpush.bf16.msrb.mxu0 %v1062_v28  ;;  %v1078_v38 = vpack.c.bf16 %v749_v30, %v748_v29  ;;  %v714_v39 = vcvt.s32.f32 %v330_v31  ;;  %v346_v40 = vunpack.c.2.s8 %v182_v27  ;;  %v347_v41 = vunpack.c.3.s8 %v182_v27 }
  0x42   :  { %1282 = vmatpush.bf16.msrb.mxu1 %v1070_v33  ;;  %v1086_v42 = vpack.c.bf16 %v765_v35, %v764_v34  ;;  %v715_v43 = vcvt.s32.f32 %v331_v36  ;;  %v362_v44 = vunpack.c.2.s8 %v186_v32  ;;  %v363_v45 = vunpack.c.3.s8 %v186_v32 }
  0x43   :  { %1295 = vmatpush.bf16.msrb.mxu2 %v1078_v38  ;;  %v730_v46 = vcvt.s32.f32 %v346_v40  ;;  %v731_v47 = vcvt.s32.f32 %v347_v41  ;;  %v378_v48 = vunpack.c.2.s8 %v190_v37  ;;  %v379_v49 = vunpack.c.3.s8 %v190_v37 }
  0x44   :  { %1308 = vmatpush.bf16.msrb.mxu3 %v1086_v42  ;;  %v1061_v50 = vpack.c.bf16 %v715_v43, %v714_v39  ;;  %v746_v51 = vcvt.s32.f32 %v362_v44  ;;  %v747_v52 = vcvt.s32.f32 %v363_v45  ;;  %v328_v53 = vunpack.c.0.s8 %v178_v18 }
  0x45   :  { %v1069_v55 = vpack.c.bf16 %v731_v47, %v730_v46  ;;  %v762_v56 = vcvt.s32.f32 %v378_v48  ;;  %v763_v58 = vcvt.s32.f32 %v379_v49  ;;  %v329_v59 = vunpack.c.1.s8 %v178_v18 }
  0x46   :  { %1270 = vmatpush.bf16.msrb.mxu0 %v1061_v50  ;;  %v1077_v60 = vpack.c.bf16 %v747_v52, %v746_v51  ;;  %v712_v61 = vcvt.s32.f32 %v328_v53  ;;  %v344_v0 = vunpack.c.0.s8 %v182_v27  ;;  %v345_v1 = vunpack.c.1.s8 %v182_v27  ;;  %v176_v51 = vld [vmem:[#allocation5 + $0x80] sm:$0xff]  ;;  %v1800_v53 = vld.sshfl [vmem:[#allocation1 + $0x30] sm:$0xff pattern:$0x73625140] }
  0x47   :  { %1283 = vmatpush.bf16.msrb.mxu1 %v1069_v55  ;;  %v1085_v3 = vpack.c.bf16 %v763_v58, %v762_v56  ;;  %v713_v4 = vcvt.s32.f32 %v329_v59  ;;  %v360_v6 = vunpack.c.0.s8 %v186_v32  ;;  %v361_v7 = vunpack.c.1.s8 %v186_v32  ;;  %v1798_v52 = vld [vmem:[#allocation5 + $0xa0] sm:$0xff]  ;;  %v1802_v58 = vld.sshfl [vmem:[#allocation1 + $0x20] sm:$0xff pattern:$0x73625140] }
  0x48   :  { %1296 = vmatpush.bf16.msrb.mxu2 %v1077_v60  ;;  %v728_v8 = vcvt.s32.f32 %v344_v0  ;;  %v729_v9 = vcvt.s32.f32 %v345_v1  ;;  %v376_v10 = vunpack.c.0.s8 %v190_v37  ;;  %v377_v11 = vunpack.c.1.s8 %v190_v37  ;;  %v1804_v59 = vld.sshfl [vmem:[#allocation1 + $0x38] sm:$0xff pattern:$0x73625140] }
  0x49   :  { %1309 = vmatpush.bf16.msrb.mxu3 %v1085_v3  ;;  %v1060_v13 = vpack.c.bf16 %v713_v4, %v712_v61  ;;  %v744_v14 = vcvt.s32.f32 %v360_v6  ;;  %v745_v15 = vcvt.s32.f32 %v361_v7  ;;  %v326_v16 = vunpack.c.2.s8 %v177_v2  ;;  %v72_v3 = vld [vmem:[#allocation2 + $0x18] sm:$0xff]  ;;  %v1808_v4 = vld.sshfl [vmem:[#allocation1 + $0x28] sm:$0xff pattern:$0x73625140] }
  0x4a   :  { %v1068_v18 = vpack.c.bf16 %v729_v9, %v728_v8  ;;  %v760_v19 = vcvt.s32.f32 %v376_v10  ;;  %v761_v20 = vcvt.s32.f32 %v377_v11  ;;  %v327_v21 = vunpack.c.3.s8 %v177_v2  ;;  %v188_v10 = vld [vmem:[#allocation5 + $0xe0] sm:$0xff]  ;;  %93 = vst [vmem:[#allocation1 + $0x20] ss:$4 sm:$0xff] %v72_v3 }
  0x4b   :  { %1271 = vmatpush.bf16.msrb.mxu0 %v1060_v13  ;;  %v1076_v23 = vpack.c.bf16 %v745_v15, %v744_v14  ;;  %v710_v24 = vcvt.s32.f32 %v326_v16  ;;  %v342_v25 = vunpack.c.2.s8 %v181_v12  ;;  %v343_v26 = vunpack.c.3.s8 %v181_v12 }
  0x4c   :  { %1284 = vmatpush.bf16.msrb.mxu1 %v1068_v18  ;;  %v1084_v27 = vpack.c.bf16 %v761_v20, %v760_v19  ;;  %v711_v28 = vcvt.s32.f32 %v327_v21  ;;  %v358_v29 = vunpack.c.2.s8 %v185_v17  ;;  %v359_v30 = vunpack.c.3.s8 %v185_v17 }
  0x4d   :  { %1297 = vmatpush.bf16.msrb.mxu2 %v1076_v23  ;;  %v726_v31 = vcvt.s32.f32 %v342_v25  ;;  %v727_v32 = vcvt.s32.f32 %v343_v26  ;;  %v374_v33 = vunpack.c.2.s8 %v189_v22  ;;  %v375_v34 = vunpack.c.3.s8 %v189_v22 }
  0x4e   :  { %1310 = vmatpush.bf16.msrb.mxu3 %v1084_v27  ;;  %v1059_v35 = vpack.c.bf16 %v711_v28, %v710_v24  ;;  %v742_v36 = vcvt.s32.f32 %v358_v29  ;;  %v743_v37 = vcvt.s32.f32 %v359_v30  ;;  %v138_v38 = vpack.c.bf16 %v1788_v57, %v1788_v57 }
  0x4f   :  { %v1067_v39 = vpack.c.bf16 %v727_v32, %v726_v31  ;;  %v758_v40 = vcvt.s32.f32 %v374_v33  ;;  %v759_v41 = vcvt.s32.f32 %v375_v34  ;;  %v324_v42 = vunpack.c.0.s8 %v177_v2 }
  0x50   :  { %1272 = vmatpush.bf16.msrb.mxu0 %v1059_v35  ;;  %v1075_v43 = vpack.c.bf16 %v743_v37, %v742_v36  ;;  %1250 = vmatmul.bf16.vlgmr.msra.gmra.mxu2 %v138_v38  ;;  %v325_v44 = vunpack.c.1.s8 %v177_v2  ;;  %v340_v45 = vunpack.c.0.s8 %v181_v12  ;;  %v341_v46 = vunpack.c.1.s8 %v181_v12  ;;  %v184_v2 = vld [vmem:[#allocation5 + $0xc0] sm:$0xff]  ;;  %v195_v36 = vld [vmem:[#allocation5 + $0x118] sm:$0xff] }
  0x51   :  { %1285 = vmatpush.bf16.msrb.mxu1 %v1067_v39  ;;  %v1083_v47 = vpack.c.bf16 %v759_v41, %v758_v40  ;;  %v708_v48 = vcvt.s32.f32 %v324_v42  ;;  %v356_v49 = vunpack.c.0.s8 %v185_v17  ;;  %v357_v50 = vunpack.c.1.s8 %v185_v17 }
  0x52   :  { %1298 = vmatpush.bf16.msrb.mxu2 %v1075_v43  ;;  %v709_v57 = vcvt.s32.f32 %v325_v44  ;;  %v724_v54 = vcvt.s32.f32 %v340_v45  ;;  %v725_v55 = vcvt.s32.f32 %v341_v46  ;;  %v372_v56 = vunpack.c.0.s8 %v189_v22  ;;  %v199_v45 = vld [vmem:[#allocation5 + $0x138] sm:$0xff] }
  0x53   :  { %1311 = vmatpush.bf16.msrb.mxu3 %v1083_v47  ;;  %v740_v60 = vcvt.s32.f32 %v356_v49  ;;  %v741_v61 = vcvt.s32.f32 %v357_v50  ;;  %v373_v0 = vunpack.c.1.s8 %v189_v22  ;;  %v136_v1 = vpack.c.bf16 %v1790_v62, %v1790_v62  ;;  %v203_v50 = vld [vmem:[#allocation5 + $0x158] sm:$0xff] }
  0x54   :  { %v1058_v6 = vpack.c.bf16 %v709_v57, %v708_v48  ;;  %v1066_v7 = vpack.c.bf16 %v725_v55, %v724_v54  ;;  %v756_v8 = vcvt.s32.f32 %v372_v56  ;;  %v139_v9 = vpack.c.bf16 %v1792_v63, %v1792_v63  ;;  %v207_v55 = vld [vmem:[#allocation5 + $0x178] sm:$0xff] }
  0x55   :  { %v1074_v11 = vpack.c.bf16 %v741_v61, %v740_v60  ;;  %v757_v12 = vcvt.s32.f32 %v373_v0  ;;  %1224 = vmatmul.bf16.vlgmr.msra.gmra.mxu0 %v136_v1  ;;  %v137_v13 = vpack.c.bf16 %v1794_v5, %v1794_v5  ;;  %v322_v14 = vunpack.c.2.s8 %v176_v51 }
  0x56   :  { %1273 = vmatpush.bf16.msrb.mxu0 %v1058_v6  ;;  %1286 = vmatpush.bf16.msrb.mxu1 %v1066_v7  ;;  %v323_v62 = vunpack.c.3.s8 %v176_v51  ;;  %v338_v15 = vunpack.c.2.s8 %v1798_v52  ;;  %v339_v16 = vunpack.c.3.s8 %v1798_v52  ;;  %v354_v17 = vunpack.c.2.s8 %v184_v2 }
  0x57   :  { %1299 = vmatpush.bf16.msrb.mxu2 %v1074_v11  ;;  %v1082_v18 = vpack.c.bf16 %v757_v12, %v756_v8  ;;  %1263 = vmatmul.bf16.vlgmr.msra.gmra.mxu3 %v139_v9  ;;  %v706_v63 = vcvt.s32.f32 %v322_v14  ;;  %v355_v19 = vunpack.c.3.s8 %v184_v2  ;;  %v370_v20 = vunpack.c.2.s8 %v188_v10 }
  0x58   :  { %1237 = vmatmul.bf16.vlgmr.msra.gmra.mxu1 %v137_v13  ;;  %v707_v21 = vcvt.s32.f32 %v323_v62  ;;  %v722_v22 = vcvt.s32.f32 %v338_v15  ;;  %v723_v23 = vcvt.s32.f32 %v339_v16  ;;  %v738_v5 = vcvt.s32.f32 %v354_v17 }
  0x59   :  { %1312 = vmatpush.bf16.msrb.mxu3 %v1082_v18  ;;  %v739_v24 = vcvt.s32.f32 %v355_v19  ;;  %v371_v25 = vunpack.c.3.s8 %v188_v10  ;;  %v754_v26 = vcvt.s32.f32 %v370_v20  ;;  %v320_v27 = vunpack.c.0.s8 %v176_v51 }
  0x5a   :  { %v1057_v28 = vpack.c.bf16 %v707_v21, %v706_v63  ;;  %v1065_v29 = vpack.c.bf16 %v723_v23, %v722_v22  ;;  %v321_v30 = vunpack.c.1.s8 %v176_v51  ;;  %v336_v31 = vunpack.c.0.s8 %v1798_v52 }
  0x5b   :  { %v1073_v32 = vpack.c.bf16 %v739_v24, %v738_v5  ;;  %v755_v33 = vcvt.s32.f32 %v371_v25  ;;  %v704_v34 = vcvt.s32.f32 %v320_v27  ;;  %v337_v35 = vunpack.c.1.s8 %v1798_v52 }
  0x5c   :  { %1274 = vmatpush.bf16.msrb.mxu0 %v1057_v28  ;;  %1287 = vmatpush.bf16.msrb.mxu1 %v1065_v29  ;;  %v705_v37 = vcvt.s32.f32 %v321_v30  ;;  %v720_v38 = vcvt.s32.f32 %v336_v31  ;;  %v352_v39 = vunpack.c.0.s8 %v184_v2  ;;  %v353_v40 = vunpack.c.1.s8 %v184_v2  ;;  %v194_v28 = vld [vmem:[#allocation5 + $0x110] sm:$0xff] }
  0x5d   :  { %1300 = vmatpush.bf16.msrb.mxu2 %v1073_v32  ;;  %v1081_v41 = vpack.c.bf16 %v755_v33, %v754_v26  ;;  %v721_v42 = vcvt.s32.f32 %v337_v35  ;;  %v368_v43 = vunpack.c.0.s8 %v188_v10  ;;  %v369_v44 = vunpack.c.1.s8 %v188_v10  ;;  %v198_v33 = vld [vmem:[#allocation5 + $0x130] sm:$0xff] }
  0x5e   :  { %v1056_v46 = vpack.c.bf16 %v705_v37, %v704_v34  ;;  %v736_v47 = vcvt.s32.f32 %v352_v39  ;;  %v737_v48 = vcvt.s32.f32 %v353_v40  ;;  %v398_v49 = vunpack.c.2.s8 %v195_v36  ;;  %v202_v34 = vld [vmem:[#allocation5 + $0x150] sm:$0xff] }
  0x5f   :  { %1313 = vmatpush.bf16.msrb.mxu3 %v1081_v41  ;;  %v1064_v51 = vpack.c.bf16 %v721_v42, %v720_v38  ;;  %v752_v52 = vcvt.s32.f32 %v368_v43  ;;  %v753_v57 = vcvt.s32.f32 %v369_v44  ;;  %v399_v54 = vunpack.c.3.s8 %v195_v36  ;;  %v1822_v39 = vld [vmem:[#allocation5 + $0x170] sm:$0xff] }
  0x60   :  { %1275 = vmatpush.bf16.msrb.mxu0 %v1056_v46  ;;  %v1072_v56 = vpack.c.bf16 %v737_v48, %v736_v47  ;;  %v782_v60 = vcvt.s32.f32 %v398_v49  ;;  %v414_v61 = vunpack.c.2.s8 %v199_v45  ;;  %v415_v0 = vunpack.c.3.s8 %v199_v45 }
  0x61   :  { %1288 = vmatpush.bf16.msrb.mxu1 %v1064_v51  ;;  %v1080_v1 = vpack.c.bf16 %v753_v57, %v752_v52  ;;  %v783_v2 = vcvt.s32.f32 %v399_v54  ;;  %v430_v3 = vunpack.c.2.s8 %v203_v50  ;;  %v431_v6 = vunpack.c.3.s8 %v203_v50 }
  0x62   :  { %1301 = vmatpush.bf16.msrb.mxu2 %v1072_v56  ;;  %v798_v7 = vcvt.s32.f32 %v414_v61  ;;  %v799_v8 = vcvt.s32.f32 %v415_v0  ;;  %v446_v9 = vunpack.c.2.s8 %v207_v55  ;;  %v447_v10 = vunpack.c.3.s8 %v207_v55 }
  0x63   :  { %1314 = vmatpush.bf16.msrb.mxu3 %v1080_v1  ;;  %v1095_v11 = vpack.c.bf16 %v783_v2, %v782_v60  ;;  %v814_v12 = vcvt.s32.f32 %v430_v3  ;;  %v815_v13 = vcvt.s32.f32 %v431_v6  ;;  %v396_v14 = vunpack.c.0.s8 %v195_v36 }
  0x64   :  { %v1103_v62 = vpack.c.bf16 %v799_v8, %v798_v7  ;;  %v830_v15 = vcvt.s32.f32 %v446_v9  ;;  %v831_v16 = vcvt.s32.f32 %v447_v10  ;;  %v397_v17 = vunpack.c.1.s8 %v195_v36  ;;  %v193_v8 = vld [vmem:[#allocation5 + $0x108] sm:$0xff] }
  0x65   :  { %1320 = vmatpush.bf16.msra.mxu0 %v1095_v11  ;;  %v1111_v18 = vpack.c.bf16 %v815_v13, %v814_v12  ;;  %v780_v63 = vcvt.s32.f32 %v396_v14  ;;  %v412_v19 = vunpack.c.0.s8 %v199_v45  ;;  %v413_v20 = vunpack.c.1.s8 %v199_v45  ;;  %v1830_v9 = vld.sshfl [vmem:[#allocation1] sm:$0xff pattern:$0x73625140] }
  0x66   :  { %1333 = vmatpush.bf16.msra.mxu1 %v1103_v62  ;;  %v1119_v21 = vpack.c.bf16 %v831_v16, %v830_v15  ;;  %v781_v22 = vcvt.s32.f32 %v397_v17  ;;  %v428_v23 = vunpack.c.0.s8 %v203_v50  ;;  %v429_v5 = vunpack.c.1.s8 %v203_v50  ;;  %v197_v14 = vld [vmem:[#allocation5 + $0x128] sm:$0xff]  ;;  %v73_v62 = vld [vmem:[#allocation2 + $0x20] sm:$0xff] }
  0x67   :  { %1346 = vmatpush.bf16.msra.mxu2 %v1111_v18  ;;  %v796_v24 = vcvt.s32.f32 %v412_v19  ;;  %v797_v25 = vcvt.s32.f32 %v413_v20  ;;  %v444_v26 = vunpack.c.0.s8 %v207_v55  ;;  %v445_v27 = vunpack.c.1.s8 %v207_v55  ;;  %v1837_v19 = vld.sshfl [vmem:[#allocation1 + $0x18] sm:$0xff pattern:$0x73625140] }
  0x68   :  { %1359 = vmatpush.bf16.msra.mxu3 %v1119_v21  ;;  %v1094_v29 = vpack.c.bf16 %v781_v22, %v780_v63  ;;  %v812_v30 = vcvt.s32.f32 %v428_v23  ;;  %v813_v31 = vcvt.s32.f32 %v429_v5  ;;  %v142_v32 = vpack.c.bf16 %v1800_v53, %v1800_v53  ;;  %v1835_v63 = vld.sshfl [vmem:[#allocation1 + $0x8] sm:$0xff pattern:$0x73625140]  ;;  %v201_v5 = vld [vmem:[#allocation5 + $0x148] sm:$0xff] }
  0x69   :  { %v1102_v35 = vpack.c.bf16 %v797_v25, %v796_v24  ;;  %v828_v36 = vcvt.s32.f32 %v444_v26  ;;  %v829_v37 = vcvt.s32.f32 %v445_v27  ;;  %v140_v38 = vpack.c.bf16 %v1802_v58, %v1802_v58 }
  0x6a   :  { %1321 = vmatpush.bf16.msra.mxu0 %v1094_v29  ;;  %v1110_v40 = vpack.c.bf16 %v813_v31, %v812_v30  ;;  %1302 = vmatmul.bf16.vlgmr.msrb.gmra.mxu2 %v142_v32  ;;  %v143_v41 = vpack.c.bf16 %v1804_v59, %v1804_v59  ;;  %v394_v42 = vunpack.c.2.s8 %v194_v28  ;;  %v395_v43 = vunpack.c.3.s8 %v194_v28 }
  0x6b   :  { %1334 = vmatpush.bf16.msra.mxu1 %v1102_v35  ;;  %v1118_v53 = vpack.c.bf16 %v829_v37, %v828_v36  ;;  %1276 = vmatmul.bf16.vlgmr.msrb.gmra.mxu0 %v140_v38  ;;  %v410_v44 = vunpack.c.2.s8 %v198_v33  ;;  %v411_v45 = vunpack.c.3.s8 %v198_v33  ;;  %v426_v46 = vunpack.c.2.s8 %v202_v34 }
  0x6c   :  { %1347 = vmatpush.bf16.msra.mxu2 %v1110_v40  ;;  %1315 = vmatmul.bf16.vlgmr.msrb.gmra.mxu3 %v143_v41  ;;  %v778_v47 = vcvt.s32.f32 %v394_v42  ;;  %v779_v58 = vcvt.s32.f32 %v395_v43  ;;  %v427_v48 = vunpack.c.3.s8 %v202_v34  ;;  %v442_v49 = vunpack.c.2.s8 %v1822_v39 }
  0x6d   :  { %1360 = vmatpush.bf16.msra.mxu3 %v1118_v53  ;;  %v794_v50 = vcvt.s32.f32 %v410_v44  ;;  %v795_v51 = vcvt.s32.f32 %v411_v45  ;;  %v810_v52 = vcvt.s32.f32 %v426_v46  ;;  %v443_v59 = vunpack.c.3.s8 %v1822_v39 }
  0x6e   :  { %v1093_v57 = vpack.c.bf16 %v779_v58, %v778_v47  ;;  %v811_v54 = vcvt.s32.f32 %v427_v48  ;;  %v826_v55 = vcvt.s32.f32 %v442_v49  ;;  %v141_v56 = vpack.c.bf16 %v1808_v4, %v1808_v4  ;;  %v1832_v4 = vld.sshfl [vmem:[#allocation1 + $0x10] sm:$0xff pattern:$0x73625140] }
  0x6f   :  { %v1101_v60 = vpack.c.bf16 %v795_v51, %v794_v50  ;;  %v827_v61 = vcvt.s32.f32 %v443_v59  ;;  %v392_v0 = vunpack.c.0.s8 %v194_v28  ;;  %v393_v1 = vunpack.c.1.s8 %v194_v28  ;;  %102 = vst [vmem:[#allocation1] ss:$4 sm:$0xff] %v73_v62  ;;  %v205_v28 = vld [vmem:[#allocation5 + $0x168] sm:$0xff]  ;;  %v192_v51 = vld [vmem:[#allocation5 + $0x100] sm:$0xff] }
  0x70   :  { %1322 = vmatpush.bf16.msra.mxu0 %v1093_v57  ;;  %v1109_v2 = vpack.c.bf16 %v811_v54, %v810_v52  ;;  %1289 = vmatmul.bf16.vlgmr.msrb.gmra.mxu1 %v141_v56  ;;  %v408_v3 = vunpack.c.0.s8 %v198_v33  ;;  %v409_v6 = vunpack.c.1.s8 %v198_v33  ;;  %v424_v7 = vunpack.c.0.s8 %v202_v34 }
  0x71   :  { %1335 = vmatpush.bf16.msra.mxu1 %v1101_v60  ;;  %v1117_v10 = vpack.c.bf16 %v827_v61, %v826_v55  ;;  %v776_v11 = vcvt.s32.f32 %v392_v0  ;;  %v777_v12 = vcvt.s32.f32 %v393_v1  ;;  %v425_v13 = vunpack.c.1.s8 %v202_v34  ;;  %v196_v0 = vld [vmem:[#allocation5 + $0x120] sm:$0xff] }
  0x72   :  { %1348 = vmatpush.bf16.msra.mxu2 %v1109_v2  ;;  %v792_v15 = vcvt.s32.f32 %v408_v3  ;;  %v793_v16 = vcvt.s32.f32 %v409_v6  ;;  %v808_v17 = vcvt.s32.f32 %v424_v7  ;;  %v440_v18 = vunpack.c.0.s8 %v1822_v39  ;;  %v200_v7 = vld [vmem:[#allocation5 + $0x140] sm:$0xff] }
  0x73   :  { %1361 = vmatpush.bf16.msra.mxu3 %v1117_v10  ;;  %v1092_v20 = vpack.c.bf16 %v777_v12, %v776_v11  ;;  %v809_v21 = vcvt.s32.f32 %v425_v13  ;;  %v441_v22 = vunpack.c.1.s8 %v1822_v39  ;;  %v390_v23 = vunpack.c.2.s8 %v193_v8  ;;  %v204_v13 = vld [vmem:[#allocation5 + $0x160] sm:$0xff] }
  0x74   :  { %v1100_v24 = vpack.c.bf16 %v793_v16, %v792_v15  ;;  %v824_v25 = vcvt.s32.f32 %v440_v18  ;;  %v391_v26 = vunpack.c.3.s8 %v193_v8  ;;  %v406_v27 = vunpack.c.2.s8 %v197_v14 }
  0x75   :  { %1323 = vmatpush.bf16.msra.mxu0 %v1092_v20  ;;  %v1108_v29 = vpack.c.bf16 %v809_v21, %v808_v17  ;;  %v825_v30 = vcvt.s32.f32 %v441_v22  ;;  %v774_v31 = vcvt.s32.f32 %v390_v23  ;;  %v407_v32 = vunpack.c.3.s8 %v197_v14 }
  0x76   :  { %1336 = vmatpush.bf16.msra.mxu1 %v1100_v24  ;;  %v775_v33 = vcvt.s32.f32 %v391_v26  ;;  %v790_v34 = vcvt.s32.f32 %v406_v27  ;;  %v422_v35 = vunpack.c.2.s8 %v201_v5  ;;  %v423_v36 = vunpack.c.3.s8 %v201_v5 }
  0x77   :  { %1349 = vmatpush.bf16.msra.mxu2 %v1108_v29  ;;  %v1116_v37 = vpack.c.bf16 %v825_v30, %v824_v25  ;;  %v791_v38 = vcvt.s32.f32 %v407_v32  ;;  %v438_v39 = vunpack.c.2.s8 %v205_v28  ;;  %v439_v40 = vunpack.c.3.s8 %v205_v28 }
  0x78   :  { %v1091_v41 = vpack.c.bf16 %v775_v33, %v774_v31  ;;  %v806_v42 = vcvt.s32.f32 %v422_v35  ;;  %v807_v43 = vcvt.s32.f32 %v423_v36  ;;  %v388_v53 = vunpack.c.0.s8 %v193_v8 }
  0x79   :  { %1362 = vmatpush.bf16.msra.mxu3 %v1116_v37  ;;  %v1099_v44 = vpack.c.bf16 %v791_v38, %v790_v34  ;;  %v822_v45 = vcvt.s32.f32 %v438_v39  ;;  %v823_v46 = vcvt.s32.f32 %v439_v40  ;;  %v389_v47 = vunpack.c.1.s8 %v193_v8  ;;  %v1840_v37 = vld [vmem:[#allocation5 + $0x198] sm:$0xff] }
  0x7a   :  { %1324 = vmatpush.bf16.msra.mxu0 %v1091_v41  ;;  %v1107_v58 = vpack.c.bf16 %v807_v43, %v806_v42  ;;  %v772_v48 = vcvt.s32.f32 %v388_v53  ;;  %v404_v49 = vunpack.c.0.s8 %v197_v14  ;;  %v405_v50 = vunpack.c.1.s8 %v197_v14 }
  0x7b   :  { %1337 = vmatpush.bf16.msra.mxu1 %v1099_v44  ;;  %v1115_v52 = vpack.c.bf16 %v823_v46, %v822_v45  ;;  %v773_v59 = vcvt.s32.f32 %v389_v47  ;;  %v420_v57 = vunpack.c.0.s8 %v201_v5  ;;  %v421_v54 = vunpack.c.1.s8 %v201_v5  ;;  %v215_v45 = vld [vmem:[#allocation5 + $0x1b8] sm:$0xff] }
  0x7c   :  { %1350 = vmatpush.bf16.msra.mxu2 %v1107_v58  ;;  %v788_v55 = vcvt.s32.f32 %v404_v49  ;;  %v789_v56 = vcvt.s32.f32 %v405_v50  ;;  %v436_v60 = vunpack.c.0.s8 %v205_v28  ;;  %v437_v61 = vunpack.c.1.s8 %v205_v28  ;;  %v219_v49 = vld [vmem:[#allocation5 + $0x1d8] sm:$0xff] }
  0x7d   :  { %1363 = vmatpush.bf16.msra.mxu3 %v1115_v52  ;;  %v1090_v1 = vpack.c.bf16 %v773_v59, %v772_v48  ;;  %v804_v2 = vcvt.s32.f32 %v420_v57  ;;  %v805_v3 = vcvt.s32.f32 %v421_v54  ;;  %v386_v6 = vunpack.c.2.s8 %v192_v51  ;;  %v223_v57 = vld [vmem:[#allocation5 + $0x1f8] sm:$0xff] }
  0x7e   :  { %v1098_v8 = vpack.c.bf16 %v789_v56, %v788_v55  ;;  %v820_v10 = vcvt.s32.f32 %v436_v60  ;;  %v821_v11 = vcvt.s32.f32 %v437_v61  ;;  %v387_v12 = vunpack.c.3.s8 %v192_v51 }
  0x7f   :  { %1325 = vmatpush.bf16.msra.mxu0 %v1090_v1  ;;  %v1106_v14 = vpack.c.bf16 %v805_v3, %v804_v2  ;;  %v770_v62 = vcvt.s32.f32 %v386_v6  ;;  %v402_v15 = vunpack.c.2.s8 %v196_v0  ;;  %v403_v16 = vunpack.c.3.s8 %v196_v0 }
  0x80   :  { %1338 = vmatpush.bf16.msra.mxu1 %v1098_v8  ;;  %v1114_v17 = vpack.c.bf16 %v821_v11, %v820_v10  ;;  %v771_v18 = vcvt.s32.f32 %v387_v12  ;;  %v418_v20 = vunpack.c.2.s8 %v200_v7  ;;  %v419_v21 = vunpack.c.3.s8 %v200_v7 }
  0x81   :  { %1351 = vmatpush.bf16.msra.mxu2 %v1106_v14  ;;  %v786_v22 = vcvt.s32.f32 %v402_v15  ;;  %v787_v23 = vcvt.s32.f32 %v403_v16  ;;  %v434_v5 = vunpack.c.2.s8 %v204_v13  ;;  %v435_v24 = vunpack.c.3.s8 %v204_v13 }
  0x82   :  { %1364 = vmatpush.bf16.msra.mxu3 %v1114_v17  ;;  %v1089_v25 = vpack.c.bf16 %v771_v18, %v770_v62  ;;  %v802_v26 = vcvt.s32.f32 %v418_v20  ;;  %v803_v27 = vcvt.s32.f32 %v419_v21  ;;  %v384_v28 = vunpack.c.0.s8 %v192_v51 }
  0x83   :  { %v1097_v29 = vpack.c.bf16 %v787_v23, %v786_v22  ;;  %v818_v30 = vcvt.s32.f32 %v434_v5  ;;  %v819_v31 = vcvt.s32.f32 %v435_v24  ;;  %v385_v32 = vunpack.c.1.s8 %v192_v51  ;;  %v210_v24 = vld [vmem:[#allocation5 + $0x190] sm:$0xff] }
  0x84   :  { %1326 = vmatpush.bf16.msra.mxu0 %v1089_v25  ;;  %v1105_v33 = vpack.c.bf16 %v803_v27, %v802_v26  ;;  %v768_v34 = vcvt.s32.f32 %v384_v28  ;;  %v400_v35 = vunpack.c.0.s8 %v196_v0  ;;  %v401_v36 = vunpack.c.1.s8 %v196_v0 }
  0x85   :  { %1339 = vmatpush.bf16.msra.mxu1 %v1097_v29  ;;  %v1113_v38 = vpack.c.bf16 %v819_v31, %v818_v30  ;;  %v769_v39 = vcvt.s32.f32 %v385_v32  ;;  %v416_v40 = vunpack.c.0.s8 %v200_v7  ;;  %v417_v41 = vunpack.c.1.s8 %v200_v7  ;;  %v214_v30 = vld [vmem:[#allocation5 + $0x1b0] sm:$0xff] }
  0x86   :  { %1352 = vmatpush.bf16.msra.mxu2 %v1105_v33  ;;  %v784_v42 = vcvt.s32.f32 %v400_v35  ;;  %v785_v43 = vcvt.s32.f32 %v401_v36  ;;  %v432_v53 = vunpack.c.0.s8 %v204_v13  ;;  %v433_v44 = vunpack.c.1.s8 %v204_v13  ;;  %v218_v35 = vld [vmem:[#allocation5 + $0x1d0] sm:$0xff] }
  0x87   :  { %1365 = vmatpush.bf16.msra.mxu3 %v1113_v38  ;;  %v1088_v46 = vpack.c.bf16 %v769_v39, %v768_v34  ;;  %v800_v47 = vcvt.s32.f32 %v416_v40  ;;  %v801_v58 = vcvt.s32.f32 %v417_v41  ;;  %v462_v48 = vunpack.c.2.s8 %v1840_v37  ;;  %v222_v40 = vld [vmem:[#allocation5 + $0x1f0] sm:$0xff] }
  0x88   :  { %v1096_v50 = vpack.c.bf16 %v785_v43, %v784_v42  ;;  %v816_v51 = vcvt.s32.f32 %v432_v53  ;;  %v817_v52 = vcvt.s32.f32 %v433_v44  ;;  %v463_v59 = vunpack.c.3.s8 %v1840_v37 }
  0x89   :  { %1327 = vmatpush.bf16.msra.mxu0 %v1088_v46  ;;  %v1104_v54 = vpack.c.bf16 %v801_v58, %v800_v47  ;;  %v846_v55 = vcvt.s32.f32 %v462_v48  ;;  %v478_v56 = vunpack.c.2.s8 %v215_v45  ;;  %v479_v60 = vunpack.c.3.s8 %v215_v45 }
  0x8a   :  { %1340 = vmatpush.bf16.msra.mxu1 %v1096_v50  ;;  %v1112_v61 = vpack.c.bf16 %v817_v52, %v816_v51  ;;  %v847_v0 = vcvt.s32.f32 %v463_v59  ;;  %v494_v1 = vunpack.c.2.s8 %v219_v49  ;;  %v495_v2 = vunpack.c.3.s8 %v219_v49 }
  0x8b   :  { %1353 = vmatpush.bf16.msra.mxu2 %v1104_v54  ;;  %v862_v3 = vcvt.s32.f32 %v478_v56  ;;  %v863_v6 = vcvt.s32.f32 %v479_v60  ;;  %v510_v7 = vunpack.c.2.s8 %v223_v57  ;;  %v511_v8 = vunpack.c.3.s8 %v223_v57 }
  0x8c   :  { %1366 = vmatpush.bf16.msra.mxu3 %v1112_v61  ;;  %v1127_v10 = vpack.c.bf16 %v847_v0, %v846_v55  ;;  %v878_v11 = vcvt.s32.f32 %v494_v1  ;;  %v879_v12 = vcvt.s32.f32 %v495_v2  ;;  %v144_v13 = vpack.c.bf16 %v1830_v9, %v1830_v9 }
  0x8d   :  { %v1135_v14 = vpack.c.bf16 %v863_v6, %v862_v3  ;;  %v894_v62 = vcvt.s32.f32 %v510_v7  ;;  %v895_v15 = vcvt.s32.f32 %v511_v8  ;;  %v146_v16 = vpack.c.bf16 %v1832_v4, %v1832_v4  ;;  %v209_v3 = vld [vmem:[#allocation5 + $0x188] sm:$0xff] }
  0x8e   :  { %1372 = vmatpush.bf16.msrb.mxu0 %v1127_v10  ;;  %v1143_v17 = vpack.c.bf16 %v879_v12, %v878_v11  ;;  %v145_v18 = vpack.c.bf16 %v1835_v63, %v1835_v63  ;;  %v147_v20 = vpack.c.bf16 %v1837_v19, %v1837_v19  ;;  %v460_v21 = vunpack.c.0.s8 %v1840_v37  ;;  %v1854_v6 = vld.sshfl [vmem:[#allocation1 + $0x20] sm:$0xff pattern:$0x73625140] }
  0x8f   :  { %1385 = vmatpush.bf16.msrb.mxu1 %v1135_v14  ;;  %v1151_v22 = vpack.c.bf16 %v895_v15, %v894_v62  ;;  %1328 = vmatmul.bf16.vlgmr.msra.gmra.mxu0 %v144_v13  ;;  %v461_v9 = vunpack.c.1.s8 %v1840_v37  ;;  %v476_v23 = vunpack.c.0.s8 %v215_v45  ;;  %v477_v5 = vunpack.c.1.s8 %v215_v45  ;;  %v213_v12 = vld [vmem:[#allocation5 + $0x1a8] sm:$0xff]  ;;  %v1856_v13 = vld.sshfl [vmem:[#allocation1 + $0x30] sm:$0xff pattern:$0x73625140] }
  0x90   :  { %1398 = vmatpush.bf16.msrb.mxu2 %v1143_v17  ;;  %1341 = vmatmul.bf16.vlgmr.msra.gmra.mxu1 %v145_v18  ;;  %v844_v4 = vcvt.s32.f32 %v460_v21  ;;  %v492_v25 = vunpack.c.0.s8 %v219_v49  ;;  %v493_v26 = vunpack.c.1.s8 %v219_v49  ;;  %v508_v27 = vunpack.c.0.s8 %v223_v57  ;;  %v74_v14 = vld [vmem:[#allocation2 + $0x28] sm:$0xff]  ;;  %v1858_v18 = vld.sshfl [vmem:[#allocation1 + $0x28] sm:$0xff pattern:$0x73625140] }
  0x91   :  { %1411 = vmatpush.bf16.msrb.mxu3 %v1151_v22  ;;  %1354 = vmatmul.bf16.vlgmr.msra.gmra.mxu2 %v146_v16  ;;  %v845_v63 = vcvt.s32.f32 %v461_v9  ;;  %v860_v19 = vcvt.s32.f32 %v476_v23  ;;  %v861_v28 = vcvt.s32.f32 %v477_v5  ;;  %v509_v29 = vunpack.c.1.s8 %v223_v57  ;;  %v217_v5 = vld [vmem:[#allocation5 + $0x1c8] sm:$0xff] }
  0x92   :  { %1367 = vmatmul.bf16.vlgmr.msra.gmra.mxu3 %v147_v20  ;;  %v876_v31 = vcvt.s32.f32 %v492_v25  ;;  %v877_v32 = vcvt.s32.f32 %v493_v26  ;;  %v892_v33 = vcvt.s32.f32 %v508_v27  ;;  %v458_v34 = vunpack.c.2.s8 %v210_v24  ;;  %v1860_v20 = vld.sshfl [vmem:[#allocation1 + $0x38] sm:$0xff pattern:$0x73625140]  ;;  %v221_v27 = vld [vmem:[#allocation5 + $0x1e8] sm:$0xff] }
  0x93   :  { %v1126_v36 = vpack.c.bf16 %v845_v63, %v844_v4  ;;  %v1134_v37 = vpack.c.bf16 %v861_v28, %v860_v19  ;;  %v893_v38 = vcvt.s32.f32 %v509_v29  ;;  %v459_v39 = vunpack.c.3.s8 %v210_v24  ;;  %103 = vst [vmem:[#allocation1 + $0x20] ss:$4 sm:$0xff] %v74_v14 }
  0x94   :  { %v1142_v41 = vpack.c.bf16 %v877_v32, %v876_v31  ;;  %v842_v42 = vcvt.s32.f32 %v458_v34  ;;  %v474_v43 = vunpack.c.2.s8 %v214_v30  ;;  %v475_v53 = vunpack.c.3.s8 %v214_v30 }
  0x95   :  { %1373 = vmatpush.bf16.msrb.mxu0 %v1126_v36  ;;  %1386 = vmatpush.bf16.msrb.mxu1 %v1134_v37  ;;  %v1150_v44 = vpack.c.bf16 %v893_v38, %v892_v33  ;;  %v843_v45 = vcvt.s32.f32 %v459_v39  ;;  %v490_v46 = vunpack.c.2.s8 %v218_v35  ;;  %v491_v47 = vunpack.c.3.s8 %v218_v35 }
  0x96   :  { %1399 = vmatpush.bf16.msrb.mxu2 %v1142_v41  ;;  %v858_v58 = vcvt.s32.f32 %v474_v43  ;;  %v859_v48 = vcvt.s32.f32 %v475_v53  ;;  %v506_v49 = vunpack.c.2.s8 %v222_v40  ;;  %v507_v50 = vunpack.c.3.s8 %v222_v40 }
  0x97   :  { %1412 = vmatpush.bf16.msrb.mxu3 %v1150_v44  ;;  %v1125_v51 = vpack.c.bf16 %v843_v45, %v842_v42  ;;  %v874_v52 = vcvt.s32.f32 %v490_v46  ;;  %v875_v59 = vcvt.s32.f32 %v491_v47  ;;  %v456_v57 = vunpack.c.0.s8 %v210_v24 }
  0x98   :  { %v1133_v54 = vpack.c.bf16 %v859_v48, %v858_v58  ;;  %v890_v55 = vcvt.s32.f32 %v506_v49  ;;  %v891_v56 = vcvt.s32.f32 %v507_v50  ;;  %v457_v60 = vunpack.c.1.s8 %v210_v24  ;;  %v208_v48 = vld [vmem:[#allocation5 + $0x180] sm:$0xff] }
  0x99   :  { %1374 = vmatpush.bf16.msrb.mxu0 %v1125_v51  ;;  %v1141_v61 = vpack.c.bf16 %v875_v59, %v874_v52  ;;  %v840_v0 = vcvt.s32.f32 %v456_v57  ;;  %v472_v1 = vunpack.c.0.s8 %v214_v30  ;;  %v473_v2 = vunpack.c.1.s8 %v214_v30 }
  0x9a   :  { %1387 = vmatpush.bf16.msrb.mxu1 %v1133_v54  ;;  %v1149_v7 = vpack.c.bf16 %v891_v56, %v890_v55  ;;  %v841_v8 = vcvt.s32.f32 %v457_v60  ;;  %v488_v10 = vunpack.c.0.s8 %v218_v35  ;;  %v489_v11 = vunpack.c.1.s8 %v218_v35  ;;  %v212_v56 = vld [vmem:[#allocation5 + $0x1a0] sm:$0xff] }
  0x9b   :  { %1400 = vmatpush.bf16.msrb.mxu2 %v1141_v61  ;;  %v856_v62 = vcvt.s32.f32 %v472_v1  ;;  %v857_v15 = vcvt.s32.f32 %v473_v2  ;;  %v504_v16 = vunpack.c.0.s8 %v222_v40  ;;  %v505_v17 = vunpack.c.1.s8 %v222_v40  ;;  %v216_v2 = vld [vmem:[#allocation5 + $0x1c0] sm:$0xff] }
  0x9c   :  { %1413 = vmatpush.bf16.msrb.mxu3 %v1149_v7  ;;  %v1124_v21 = vpack.c.bf16 %v841_v8, %v840_v0  ;;  %v872_v22 = vcvt.s32.f32 %v488_v10  ;;  %v873_v9 = vcvt.s32.f32 %v489_v11  ;;  %v454_v23 = vunpack.c.2.s8 %v209_v3  ;;  %v220_v11 = vld [vmem:[#allocation5 + $0x1e0] sm:$0xff] }
  0x9d   :  { %v1132_v24 = vpack.c.bf16 %v857_v15, %v856_v62  ;;  %v888_v4 = vcvt.s32.f32 %v504_v16  ;;  %v889_v25 = vcvt.s32.f32 %v505_v17  ;;  %v455_v26 = vunpack.c.3.s8 %v209_v3 }
  0x9e   :  { %1375 = vmatpush.bf16.msrb.mxu0 %v1124_v21  ;;  %v1140_v63 = vpack.c.bf16 %v873_v9, %v872_v22  ;;  %v838_v19 = vcvt.s32.f32 %v454_v23  ;;  %v470_v28 = vunpack.c.2.s8 %v213_v12  ;;  %v471_v29 = vunpack.c.3.s8 %v213_v12 }
  0x9f   :  { %1388 = vmatpush.bf16.msrb.mxu1 %v1132_v24  ;;  %v1148_v30 = vpack.c.bf16 %v889_v25, %v888_v4  ;;  %v839_v31 = vcvt.s32.f32 %v455_v26  ;;  %v486_v32 = vunpack.c.2.s8 %v217_v5  ;;  %v487_v33 = vunpack.c.3.s8 %v217_v5 }
  0xa0   :  { %1401 = vmatpush.bf16.msrb.mxu2 %v1140_v63  ;;  %v854_v34 = vcvt.s32.f32 %v470_v28  ;;  %v855_v35 = vcvt.s32.f32 %v471_v29  ;;  %v502_v36 = vunpack.c.2.s8 %v221_v27  ;;  %v503_v37 = vunpack.c.3.s8 %v221_v27 }
  0xa1   :  { %1414 = vmatpush.bf16.msrb.mxu3 %v1148_v30  ;;  %v1123_v38 = vpack.c.bf16 %v839_v31, %v838_v19  ;;  %v870_v39 = vcvt.s32.f32 %v486_v32  ;;  %v871_v40 = vcvt.s32.f32 %v487_v33  ;;  %v452_v41 = vunpack.c.0.s8 %v209_v3 }
  0xa2   :  { %v1131_v42 = vpack.c.bf16 %v855_v35, %v854_v34  ;;  %v886_v43 = vcvt.s32.f32 %v502_v36  ;;  %v887_v53 = vcvt.s32.f32 %v503_v37  ;;  %v453_v44 = vunpack.c.1.s8 %v209_v3  ;;  %v1862_v34 = vld [vmem:[#allocation5 + $0x218] sm:$0xff] }
  0xa3   :  { %1376 = vmatpush.bf16.msrb.mxu0 %v1123_v38  ;;  %v1139_v45 = vpack.c.bf16 %v871_v40, %v870_v39  ;;  %v836_v46 = vcvt.s32.f32 %v452_v41  ;;  %v468_v47 = vunpack.c.0.s8 %v213_v12  ;;  %v469_v58 = vunpack.c.1.s8 %v213_v12 }
  0xa4   :  { %1389 = vmatpush.bf16.msrb.mxu1 %v1131_v42  ;;  %v1147_v49 = vpack.c.bf16 %v887_v53, %v886_v43  ;;  %v837_v50 = vcvt.s32.f32 %v453_v44  ;;  %v484_v51 = vunpack.c.0.s8 %v217_v5  ;;  %v485_v52 = vunpack.c.1.s8 %v217_v5  ;;  %v231_v43 = vld [vmem:[#allocation5 + $0x238] sm:$0xff] }
  0xa5   :  { %1402 = vmatpush.bf16.msrb.mxu2 %v1139_v45  ;;  %v852_v59 = vcvt.s32.f32 %v468_v47  ;;  %v853_v57 = vcvt.s32.f32 %v469_v58  ;;  %v500_v54 = vunpack.c.0.s8 %v221_v27  ;;  %v501_v55 = vunpack.c.1.s8 %v221_v27  ;;  %v235_v47 = vld [vmem:[#allocation5 + $0x258] sm:$0xff] }
  0xa6   :  { %1415 = vmatpush.bf16.msrb.mxu3 %v1147_v49  ;;  %v1122_v60 = vpack.c.bf16 %v837_v50, %v836_v46  ;;  %v868_v61 = vcvt.s32.f32 %v484_v51  ;;  %v869_v0 = vcvt.s32.f32 %v485_v52  ;;  %v450_v1 = vunpack.c.2.s8 %v208_v48  ;;  %v239_v51 = vld [vmem:[#allocation5 + $0x278] sm:$0xff] }
  0xa7   :  { %v1130_v3 = vpack.c.bf16 %v853_v57, %v852_v59  ;;  %v884_v7 = vcvt.s32.f32 %v500_v54  ;;  %v885_v8 = vcvt.s32.f32 %v501_v55  ;;  %v451_v10 = vunpack.c.3.s8 %v208_v48 }
  0xa8   :  { %1377 = vmatpush.bf16.msrb.mxu0 %v1122_v60  ;;  %v1138_v12 = vpack.c.bf16 %v869_v0, %v868_v61  ;;  %v834_v14 = vcvt.s32.f32 %v450_v1  ;;  %v466_v62 = vunpack.c.2.s8 %v212_v56  ;;  %v467_v15 = vunpack.c.3.s8 %v212_v56 }
  0xa9   :  { %1390 = vmatpush.bf16.msrb.mxu1 %v1130_v3  ;;  %v1146_v16 = vpack.c.bf16 %v885_v8, %v884_v7  ;;  %v835_v17 = vcvt.s32.f32 %v451_v10  ;;  %v482_v21 = vunpack.c.2.s8 %v216_v2  ;;  %v483_v22 = vunpack.c.3.s8 %v216_v2 }
  0xaa   :  { %1403 = vmatpush.bf16.msrb.mxu2 %v1138_v12  ;;  %v850_v9 = vcvt.s32.f32 %v466_v62  ;;  %v851_v23 = vcvt.s32.f32 %v467_v15  ;;  %v498_v5 = vunpack.c.2.s8 %v220_v11  ;;  %v499_v24 = vunpack.c.3.s8 %v220_v11 }
  0xab   :  { %1416 = vmatpush.bf16.msrb.mxu3 %v1146_v16  ;;  %v1121_v4 = vpack.c.bf16 %v835_v17, %v834_v14  ;;  %v866_v25 = vcvt.s32.f32 %v482_v21  ;;  %v867_v26 = vcvt.s32.f32 %v483_v22  ;;  %v448_v27 = vunpack.c.0.s8 %v208_v48 }
  0xac   :  { %v1129_v63 = vpack.c.bf16 %v851_v23, %v850_v9  ;;  %v882_v19 = vcvt.s32.f32 %v498_v5  ;;  %v883_v28 = vcvt.s32.f32 %v499_v24  ;;  %v449_v29 = vunpack.c.1.s8 %v208_v48  ;;  %v226_v24 = vld [vmem:[#allocation5 + $0x210] sm:$0xff] }
  0xad   :  { %1378 = vmatpush.bf16.msrb.mxu0 %v1121_v4  ;;  %v1137_v30 = vpack.c.bf16 %v867_v26, %v866_v25  ;;  %v832_v31 = vcvt.s32.f32 %v448_v27  ;;  %v464_v32 = vunpack.c.0.s8 %v212_v56  ;;  %v465_v33 = vunpack.c.1.s8 %v212_v56 }
  0xae   :  { %1391 = vmatpush.bf16.msrb.mxu1 %v1129_v63  ;;  %v1145_v35 = vpack.c.bf16 %v883_v28, %v882_v19  ;;  %v833_v36 = vcvt.s32.f32 %v449_v29  ;;  %v480_v37 = vunpack.c.0.s8 %v216_v2  ;;  %v481_v38 = vunpack.c.1.s8 %v216_v2  ;;  %v230_v19 = vld [vmem:[#allocation5 + $0x230] sm:$0xff] }
  0xaf   :  { %1404 = vmatpush.bf16.msrb.mxu2 %v1137_v30  ;;  %v848_v39 = vcvt.s32.f32 %v464_v32  ;;  %v849_v40 = vcvt.s32.f32 %v465_v33  ;;  %v496_v41 = vunpack.c.0.s8 %v220_v11  ;;  %v497_v42 = vunpack.c.1.s8 %v220_v11  ;;  %v234_v32 = vld [vmem:[#allocation5 + $0x250] sm:$0xff] }
  0xb0   :  { %1417 = vmatpush.bf16.msrb.mxu3 %v1145_v35  ;;  %v1120_v53 = vpack.c.bf16 %v833_v36, %v832_v31  ;;  %v864_v44 = vcvt.s32.f32 %v480_v37  ;;  %v865_v45 = vcvt.s32.f32 %v481_v38  ;;  %v526_v46 = vunpack.c.2.s8 %v1862_v34  ;;  %v238_v37 = vld [vmem:[#allocation5 + $0x270] sm:$0xff] }
  0xb1   :  { %v1128_v58 = vpack.c.bf16 %v849_v40, %v848_v39  ;;  %v880_v48 = vcvt.s32.f32 %v496_v41  ;;  %v881_v49 = vcvt.s32.f32 %v497_v42  ;;  %v527_v50 = vunpack.c.3.s8 %v1862_v34 }
  0xb2   :  { %1379 = vmatpush.bf16.msrb.mxu0 %v1120_v53  ;;  %v1136_v52 = vpack.c.bf16 %v865_v45, %v864_v44  ;;  %v910_v59 = vcvt.s32.f32 %v526_v46  ;;  %v542_v57 = vunpack.c.2.s8 %v231_v43  ;;  %v543_v54 = vunpack.c.3.s8 %v231_v43 }
  0xb3   :  { %1392 = vmatpush.bf16.msrb.mxu1 %v1128_v58  ;;  %v1144_v55 = vpack.c.bf16 %v881_v49, %v880_v48  ;;  %v911_v56 = vcvt.s32.f32 %v527_v50  ;;  %v558_v60 = vunpack.c.2.s8 %v235_v47  ;;  %v559_v61 = vunpack.c.3.s8 %v235_v47 }
  0xb4   :  { %1405 = vmatpush.bf16.msrb.mxu2 %v1136_v52  ;;  %v926_v0 = vcvt.s32.f32 %v542_v57  ;;  %v927_v1 = vcvt.s32.f32 %v543_v54  ;;  %v574_v2 = vunpack.c.2.s8 %v239_v51  ;;  %v575_v3 = vunpack.c.3.s8 %v239_v51 }
  0xb5   :  { %1418 = vmatpush.bf16.msrb.mxu3 %v1144_v55  ;;  %v1159_v7 = vpack.c.bf16 %v911_v56, %v910_v59  ;;  %v942_v8 = vcvt.s32.f32 %v558_v60  ;;  %v943_v10 = vcvt.s32.f32 %v559_v61  ;;  %v148_v11 = vpack.c.bf16 %v1854_v6, %v1854_v6 }
  0xb6   :  { %v1167_v12 = vpack.c.bf16 %v927_v1, %v926_v0  ;;  %v958_v14 = vcvt.s32.f32 %v574_v2  ;;  %v959_v62 = vcvt.s32.f32 %v575_v3  ;;  %v150_v15 = vpack.c.bf16 %v1856_v13, %v1856_v13  ;;  %v225_v0 = vld [vmem:[#allocation5 + $0x208] sm:$0xff] }
  0xb7   :  { %1424 = vmatpush.bf16.msra.mxu0 %v1159_v7  ;;  %v1175_v16 = vpack.c.bf16 %v943_v10, %v942_v8  ;;  %v149_v17 = vpack.c.bf16 %v1858_v18, %v1858_v18  ;;  %v151_v21 = vpack.c.bf16 %v1860_v20, %v1860_v20  ;;  %v524_v22 = vunpack.c.0.s8 %v1862_v34 }
  0xb8   :  { %1437 = vmatpush.bf16.msra.mxu1 %v1167_v12  ;;  %v1183_v9 = vpack.c.bf16 %v959_v62, %v958_v14  ;;  %1380 = vmatmul.bf16.vlgmr.msrb.gmra.mxu0 %v148_v11  ;;  %v525_v6 = vunpack.c.1.s8 %v1862_v34  ;;  %v540_v23 = vunpack.c.0.s8 %v231_v43  ;;  %v541_v5 = vunpack.c.1.s8 %v231_v43  ;;  %v229_v14 = vld [vmem:[#allocation5 + $0x228] sm:$0xff] }
  0xb9   :  { %1450 = vmatpush.bf16.msra.mxu2 %v1175_v16  ;;  %1393 = vmatmul.bf16.vlgmr.msrb.gmra.mxu1 %v149_v17  ;;  %v908_v13 = vcvt.s32.f32 %v524_v22  ;;  %v556_v4 = vunpack.c.0.s8 %v235_v47  ;;  %v557_v25 = vunpack.c.1.s8 %v235_v47  ;;  %v572_v26 = vunpack.c.0.s8 %v239_v51 }
  0xba   :  { %1463 = vmatpush.bf16.msra.mxu3 %v1183_v9  ;;  %1406 = vmatmul.bf16.vlgmr.msrb.gmra.mxu2 %v150_v15  ;;  %v909_v18 = vcvt.s32.f32 %v525_v6  ;;  %v924_v20 = vcvt.s32.f32 %v540_v23  ;;  %v925_v27 = vcvt.s32.f32 %v541_v5  ;;  %v573_v63 = vunpack.c.1.s8 %v239_v51  ;;  %v237_v5 = vld [vmem:[#allocation5 + $0x268] sm:$0xff] }
  0xbb   :  { %1419 = vmatmul.bf16.vlgmr.msrb.gmra.mxu3 %v151_v21  ;;  %v940_v28 = vcvt.s32.f32 %v556_v4  ;;  %v941_v29 = vcvt.s32.f32 %v557_v25  ;;  %v956_v30 = vcvt.s32.f32 %v572_v26  ;;  %v522_v31 = vunpack.c.2.s8 %v226_v24  ;;  %v233_v21 = vld [vmem:[#allocation5 + $0x248] sm:$0xff] }
  0xbc   :  { %v1158_v33 = vpack.c.bf16 %v909_v18, %v908_v13  ;;  %v1166_v34 = vpack.c.bf16 %v925_v27, %v924_v20  ;;  %v957_v35 = vcvt.s32.f32 %v573_v63  ;;  %v523_v36 = vunpack.c.3.s8 %v226_v24 }
  0xbd   :  { %v1174_v38 = vpack.c.bf16 %v941_v29, %v940_v28  ;;  %v906_v39 = vcvt.s32.f32 %v522_v31  ;;  %v538_v40 = vunpack.c.2.s8 %v230_v19  ;;  %v539_v41 = vunpack.c.3.s8 %v230_v19 }
  0xbe   :  { %1425 = vmatpush.bf16.msra.mxu0 %v1158_v33  ;;  %1438 = vmatpush.bf16.msra.mxu1 %v1166_v34  ;;  %v1182_v42 = vpack.c.bf16 %v957_v35, %v956_v30  ;;  %v907_v43 = vcvt.s32.f32 %v523_v36  ;;  %v554_v53 = vunpack.c.2.s8 %v234_v32  ;;  %v555_v44 = vunpack.c.3.s8 %v234_v32 }
  0xbf   :  { %1451 = vmatpush.bf16.msra.mxu2 %v1174_v38  ;;  %v922_v45 = vcvt.s32.f32 %v538_v40  ;;  %v923_v46 = vcvt.s32.f32 %v539_v41  ;;  %v570_v47 = vunpack.c.2.s8 %v238_v37  ;;  %v571_v58 = vunpack.c.3.s8 %v238_v37 }
  0xc0   :  { %1464 = vmatpush.bf16.msra.mxu3 %v1182_v42  ;;  %v1157_v48 = vpack.c.bf16 %v907_v43, %v906_v39  ;;  %v938_v49 = vcvt.s32.f32 %v554_v53  ;;  %v939_v50 = vcvt.s32.f32 %v555_v44  ;;  %v520_v51 = vunpack.c.0.s8 %v226_v24  ;;  %v224_v42 = vld [vmem:[#allocation5 + $0x200] sm:$0xff] }
  0xc1   :  { %v1165_v52 = vpack.c.bf16 %v923_v46, %v922_v45  ;;  %v954_v59 = vcvt.s32.f32 %v570_v47  ;;  %v955_v57 = vcvt.s32.f32 %v571_v58  ;;  %v521_v54 = vunpack.c.1.s8 %v226_v24 }
  0xc2   :  { %1426 = vmatpush.bf16.msra.mxu0 %v1157_v48  ;;  %v1173_v55 = vpack.c.bf16 %v939_v50, %v938_v49  ;;  %v904_v56 = vcvt.s32.f32 %v520_v51  ;;  %v536_v60 = vunpack.c.0.s8 %v230_v19  ;;  %v537_v61 = vunpack.c.1.s8 %v230_v19  ;;  %v228_v49 = vld [vmem:[#allocation5 + $0x220] sm:$0xff] }
  0xc3   :  { %1439 = vmatpush.bf16.msra.mxu1 %v1165_v52  ;;  %v1181_v1 = vpack.c.bf16 %v955_v57, %v954_v59  ;;  %v905_v2 = vcvt.s32.f32 %v521_v54  ;;  %v552_v3 = vunpack.c.0.s8 %v234_v32  ;;  %v553_v7 = vunpack.c.1.s8 %v234_v32  ;;  %v232_v57 = vld [vmem:[#allocation5 + $0x240] sm:$0xff] }
  0xc4   :  { %1452 = vmatpush.bf16.msra.mxu2 %v1173_v55  ;;  %v920_v8 = vcvt.s32.f32 %v536_v60  ;;  %v921_v10 = vcvt.s32.f32 %v537_v61  ;;  %v568_v11 = vunpack.c.0.s8 %v238_v37  ;;  %v569_v12 = vunpack.c.1.s8 %v238_v37  ;;  %v236_v61 = vld [vmem:[#allocation5 + $0x260] sm:$0xff] }
  0xc5   :  { %1465 = vmatpush.bf16.msra.mxu3 %v1181_v1  ;;  %v1156_v62 = vpack.c.bf16 %v905_v2, %v904_v56  ;;  %v936_v15 = vcvt.s32.f32 %v552_v3  ;;  %v937_v16 = vcvt.s32.f32 %v553_v7  ;;  %v518_v17 = vunpack.c.2.s8 %v225_v0 }
  0xc6   :  { %v1164_v22 = vpack.c.bf16 %v921_v10, %v920_v8  ;;  %v952_v9 = vcvt.s32.f32 %v568_v11  ;;  %v953_v6 = vcvt.s32.f32 %v569_v12  ;;  %v519_v23 = vunpack.c.3.s8 %v225_v0 }
  0xc7   :  { %1427 = vmatpush.bf16.msra.mxu0 %v1156_v62  ;;  %v1172_v24 = vpack.c.bf16 %v937_v16, %v936_v15  ;;  %v902_v13 = vcvt.s32.f32 %v518_v17  ;;  %v534_v4 = vunpack.c.2.s8 %v229_v14  ;;  %v535_v25 = vunpack.c.3.s8 %v229_v14 }
  0xc8   :  { %1440 = vmatpush.bf16.msra.mxu1 %v1164_v22  ;;  %v1180_v26 = vpack.c.bf16 %v953_v6, %v952_v9  ;;  %v903_v18 = vcvt.s32.f32 %v519_v23  ;;  %v550_v20 = vunpack.c.2.s8 %v233_v21  ;;  %v551_v27 = vunpack.c.3.s8 %v233_v21 }
  0xc9   :  { %1453 = vmatpush.bf16.msra.mxu2 %v1172_v24  ;;  %v918_v63 = vcvt.s32.f32 %v534_v4  ;;  %v919_v19 = vcvt.s32.f32 %v535_v25  ;;  %v566_v28 = vunpack.c.2.s8 %v237_v5  ;;  %v567_v29 = vunpack.c.3.s8 %v237_v5 }
  0xca   :  { %1466 = vmatpush.bf16.msra.mxu3 %v1180_v26  ;;  %v1155_v30 = vpack.c.bf16 %v903_v18, %v902_v13  ;;  %v934_v31 = vcvt.s32.f32 %v550_v20  ;;  %v935_v32 = vcvt.s32.f32 %v551_v27  ;;  %v516_v33 = vunpack.c.0.s8 %v225_v0  ;;  %v1876_v26 = vld [vmem:[#allocation5 + $0x298] sm:$0xff] }
  0xcb   :  { %v1163_v34 = vpack.c.bf16 %v919_v19, %v918_v63  ;;  %v950_v35 = vcvt.s32.f32 %v566_v28  ;;  %v951_v36 = vcvt.s32.f32 %v567_v29  ;;  %v517_v37 = vunpack.c.1.s8 %v225_v0 }
  0xcc   :  { %1428 = vmatpush.bf16.msra.mxu0 %v1155_v30  ;;  %v1171_v38 = vpack.c.bf16 %v935_v32, %v934_v31  ;;  %v900_v39 = vcvt.s32.f32 %v516_v33  ;;  %v532_v40 = vunpack.c.0.s8 %v229_v14  ;;  %v533_v41 = vunpack.c.1.s8 %v229_v14  ;;  %v247_v31 = vld [vmem:[#allocation5 + $0x2b8] sm:$0xff] }
  0xcd   :  { %1441 = vmatpush.bf16.msra.mxu1 %v1163_v34  ;;  %v1179_v43 = vpack.c.bf16 %v951_v36, %v950_v35  ;;  %v901_v53 = vcvt.s32.f32 %v517_v37  ;;  %v548_v44 = vunpack.c.0.s8 %v233_v21  ;;  %v549_v45 = vunpack.c.1.s8 %v233_v21  ;;  %v251_v36 = vld [vmem:[#allocation5 + $0x2d8] sm:$0xff] }
  0xce   :  { %1454 = vmatpush.bf16.msra.mxu2 %v1171_v38  ;;  %v916_v46 = vcvt.s32.f32 %v532_v40  ;;  %v917_v47 = vcvt.s32.f32 %v533_v41  ;;  %v564_v58 = vunpack.c.0.s8 %v237_v5  ;;  %v565_v48 = vunpack.c.1.s8 %v237_v5  ;;  %v255_v41 = vld [vmem:[#allocation5 + $0x2f8] sm:$0xff] }
  0xcf   :  { %1467 = vmatpush.bf16.msra.mxu3 %v1179_v43  ;;  %v1154_v50 = vpack.c.bf16 %v901_v53, %v900_v39  ;;  %v932_v51 = vcvt.s32.f32 %v548_v44  ;;  %v933_v52 = vcvt.s32.f32 %v549_v45  ;;  %v514_v59 = vunpack.c.2.s8 %v224_v42  ;;  %v104_v45 = vld.sshfl [vmem:[#allocation1] sm:$0xff pattern:$0x73625140] }
  0xd0   :  { %v1162_v54 = vpack.c.bf16 %v917_v47, %v916_v46  ;;  %v948_v55 = vcvt.s32.f32 %v564_v58  ;;  %v949_v56 = vcvt.s32.f32 %v565_v48  ;;  %v515_v60 = vunpack.c.3.s8 %v224_v42 }
  0xd1   :  { %1429 = vmatpush.bf16.msra.mxu0 %v1154_v50  ;;  %v1170_v0 = vpack.c.bf16 %v933_v52, %v932_v51  ;;  %v898_v1 = vcvt.s32.f32 %v514_v59  ;;  %v530_v2 = vunpack.c.2.s8 %v228_v49  ;;  %v531_v3 = vunpack.c.3.s8 %v228_v49 }
  0xd2   :  { %1442 = vmatpush.bf16.msra.mxu1 %v1162_v54  ;;  %v1178_v7 = vpack.c.bf16 %v949_v56, %v948_v55  ;;  %v899_v8 = vcvt.s32.f32 %v515_v60  ;;  %v546_v10 = vunpack.c.2.s8 %v232_v57  ;;  %v547_v11 = vunpack.c.3.s8 %v232_v57  ;;  %v107_v54 = vld.sshfl [vmem:[#allocation1 + $0x18] sm:$0xff pattern:$0x73625140] }
  0xd3   :  { %1455 = vmatpush.bf16.msra.mxu2 %v1170_v0  ;;  %v914_v12 = vcvt.s32.f32 %v530_v2  ;;  %v915_v14 = vcvt.s32.f32 %v531_v3  ;;  %v562_v62 = vunpack.c.2.s8 %v236_v61  ;;  %v563_v15 = vunpack.c.3.s8 %v236_v61 }
  0xd4   :  { %1468 = vmatpush.bf16.msra.mxu3 %v1178_v7  ;;  %v1153_v16 = vpack.c.bf16 %v899_v8, %v898_v1  ;;  %v930_v17 = vcvt.s32.f32 %v546_v10  ;;  %v931_v21 = vcvt.s32.f32 %v547_v11  ;;  %v512_v22 = vunpack.c.0.s8 %v224_v42 }
  0xd5   :  { %v1161_v9 = vpack.c.bf16 %v915_v14, %v914_v12  ;;  %v946_v6 = vcvt.s32.f32 %v562_v62  ;;  %v947_v23 = vcvt.s32.f32 %v563_v15  ;;  %v513_v5 = vunpack.c.1.s8 %v224_v42 }
  0xd6   :  { %1430 = vmatpush.bf16.msra.mxu0 %v1153_v16  ;;  %v1169_v24 = vpack.c.bf16 %v931_v21, %v930_v17  ;;  %v896_v13 = vcvt.s32.f32 %v512_v22  ;;  %v528_v4 = vunpack.c.0.s8 %v228_v49  ;;  %v529_v25 = vunpack.c.1.s8 %v228_v49  ;;  %v106_v49 = vld.sshfl [vmem:[#allocation1 + $0x10] sm:$0xff pattern:$0x73625140]  ;;  %v242_v16 = vld [vmem:[#allocation5 + $0x290] sm:$0xff] }
  0xd7   :  { %1443 = vmatpush.bf16.msra.mxu1 %v1161_v9  ;;  %v1177_v18 = vpack.c.bf16 %v947_v23, %v946_v6  ;;  %v897_v20 = vcvt.s32.f32 %v513_v5  ;;  %v544_v27 = vunpack.c.0.s8 %v232_v57  ;;  %v545_v63 = vunpack.c.1.s8 %v232_v57  ;;  %v105_v57 = vld.sshfl [vmem:[#allocation1 + $0x8] sm:$0xff pattern:$0x73625140] }
  0xd8   :  { %1456 = vmatpush.bf16.msra.mxu2 %v1169_v24  ;;  %v912_v19 = vcvt.s32.f32 %v528_v4  ;;  %v913_v28 = vcvt.s32.f32 %v529_v25  ;;  %v560_v29 = vunpack.c.0.s8 %v236_v61  ;;  %v561_v30 = vunpack.c.1.s8 %v236_v61 }
  0xd9   :  { %1469 = vmatpush.bf16.msra.mxu3 %v1177_v18  ;;  %v1152_v32 = vpack.c.bf16 %v897_v20, %v896_v13  ;;  %v928_v33 = vcvt.s32.f32 %v544_v27  ;;  %v929_v34 = vcvt.s32.f32 %v545_v63  ;;  %v590_v35 = vunpack.c.2.s8 %v1876_v26  ;;  %v246_v13 = vld [vmem:[#allocation5 + $0x2b0] sm:$0xff] }
  0xda   :  { %v1160_v37 = vpack.c.bf16 %v913_v28, %v912_v19  ;;  %v944_v38 = vcvt.s32.f32 %v560_v29  ;;  %v945_v39 = vcvt.s32.f32 %v561_v30  ;;  %v591_v40 = vunpack.c.3.s8 %v1876_v26  ;;  %v250_v20 = vld [vmem:[#allocation5 + $0x2d0] sm:$0xff] }
  0xdb   :  { %1431 = vmatpush.bf16.msra.mxu0 %v1152_v32  ;;  %v1168_v42 = vpack.c.bf16 %v929_v34, %v928_v33  ;;  %v974_v43 = vcvt.s32.f32 %v590_v35  ;;  %v606_v53 = vunpack.c.2.s8 %v247_v31  ;;  %v607_v44 = vunpack.c.3.s8 %v247_v31  ;;  %v254_v29 = vld [vmem:[#allocation5 + $0x2f0] sm:$0xff] }
  0xdc   :  { %1444 = vmatpush.bf16.msra.mxu1 %v1160_v37  ;;  %v1176_v46 = vpack.c.bf16 %v945_v39, %v944_v38  ;;  %v975_v47 = vcvt.s32.f32 %v591_v40  ;;  %v622_v58 = vunpack.c.2.s8 %v251_v36  ;;  %v623_v48 = vunpack.c.3.s8 %v251_v36  ;;  %v1882_v38 = vpop.f32.mrf.mxu0 }
  0xdd   :  { %1457 = vmatpush.bf16.msra.mxu2 %v1168_v42  ;;  %v990_v50 = vcvt.s32.f32 %v606_v53  ;;  %v991_v51 = vcvt.s32.f32 %v607_v44  ;;  %v638_v52 = vunpack.c.2.s8 %v255_v41  ;;  %v639_v59 = vunpack.c.3.s8 %v255_v41 }
  0xde   :  { %1470 = vmatpush.bf16.msra.mxu3 %v1176_v46  ;;  %v1191_v55 = vpack.c.bf16 %v975_v47, %v974_v43  ;;  %v1006_v56 = vcvt.s32.f32 %v622_v58  ;;  %v1007_v60 = vcvt.s32.f32 %v623_v48  ;;  %v152_v61 = vpack.c.bf16 %v104_v45, %v104_v45 }
  0xdf   :  { %v1199_v0 = vpack.c.bf16 %v991_v51, %v990_v50  ;;  %v1022_v1 = vcvt.s32.f32 %v638_v52  ;;  %v1023_v2 = vcvt.s32.f32 %v639_v59  ;;  %v154_v3 = vpack.c.bf16 %v106_v49, %v106_v49  ;;  %v1884_v49 = vpop.f32.mrf.mxu1  ;;  %v1886_v50 = vpop.f32.mrf.mxu2 }
  0xe0   :  { %1476 = vmatpush.bf16.msrb.mxu0 %v1191_v55  ;;  %v1207_v7 = vpack.c.bf16 %v1007_v60, %v1006_v56  ;;  %v153_v8 = vpack.c.bf16 %v105_v57, %v105_v57  ;;  %v155_v10 = vpack.c.bf16 %v107_v54, %v107_v54  ;;  %v588_v11 = vunpack.c.0.s8 %v1876_v26  ;;  %v241_v54 = vld [vmem:[#allocation5 + $0x288] sm:$0xff]  ;;  %v1888_v55 = vpop.f32.mrf.mxu3 }
  0xe1   :  { %1489 = vmatpush.bf16.msrb.mxu1 %v1199_v0  ;;  %v1215_v12 = vpack.c.bf16 %v1023_v2, %v1022_v1  ;;  %1432 = vmatmul.bf16.vlgmr.msra.gmra.mxu0 %v152_v61  ;;  %v589_v14 = vunpack.c.1.s8 %v1876_v26  ;;  %v604_v62 = vunpack.c.0.s8 %v247_v31  ;;  %v605_v15 = vunpack.c.1.s8 %v247_v31 }
  0xe2   :  { %1502 = vmatpush.bf16.msrb.mxu2 %v1207_v7  ;;  %1445 = vmatmul.bf16.vlgmr.msra.gmra.mxu1 %v153_v8  ;;  %v972_v17 = vcvt.s32.f32 %v588_v11  ;;  %v620_v21 = vunpack.c.0.s8 %v251_v36  ;;  %v621_v22 = vunpack.c.1.s8 %v251_v36  ;;  %v636_v9 = vunpack.c.0.s8 %v255_v41  ;;  %v245_v8 = vld [vmem:[#allocation5 + $0x2a8] sm:$0xff] }
  0xe3   :  { %1515 = vmatpush.bf16.msrb.mxu3 %v1215_v12  ;;  %1458 = vmatmul.bf16.vlgmr.msra.gmra.mxu2 %v154_v3  ;;  %v973_v6 = vcvt.s32.f32 %v589_v14  ;;  %v988_v23 = vcvt.s32.f32 %v604_v62  ;;  %v989_v5 = vcvt.s32.f32 %v605_v15  ;;  %v637_v24 = vunpack.c.1.s8 %v255_v41  ;;  %v249_v62 = vld [vmem:[#allocation5 + $0x2c8] sm:$0xff] }
  0xe4   :  { %1471 = vmatmul.bf16.vlgmr.msra.gmra.mxu3 %v155_v10  ;;  %v1004_v4 = vcvt.s32.f32 %v620_v21  ;;  %v1005_v25 = vcvt.s32.f32 %v621_v22  ;;  %v1020_v26 = vcvt.s32.f32 %v636_v9  ;;  %v586_v18 = vunpack.c.2.s8 %v242_v16  ;;  %v253_v22 = vld [vmem:[#allocation5 + $0x2e8] sm:$0xff]  ;;  %v1227_v9 = vpop.f32.mrf.mxu0 }
  0xe5   :  { %v1190_v27 = vpack.c.bf16 %v973_v6, %v972_v17  ;;  %v1198_v63 = vpack.c.bf16 %v989_v5, %v988_v23  ;;  %v1021_v19 = vcvt.s32.f32 %v637_v24  ;;  %v587_v28 = vunpack.c.3.s8 %v242_v16 }
  0xe6   :  { %v1206_v30 = vpack.c.bf16 %v1005_v25, %v1004_v4  ;;  %v970_v31 = vcvt.s32.f32 %v586_v18  ;;  %v602_v32 = vunpack.c.2.s8 %v246_v13  ;;  %v603_v33 = vunpack.c.3.s8 %v246_v13 }
  0xe7   :  { %1477 = vmatpush.bf16.msrb.mxu0 %v1190_v27  ;;  %1490 = vmatpush.bf16.msrb.mxu1 %v1198_v63  ;;  %v1214_v34 = vpack.c.bf16 %v1021_v19, %v1020_v26  ;;  %v971_v35 = vcvt.s32.f32 %v587_v28  ;;  %v618_v36 = vunpack.c.2.s8 %v250_v20  ;;  %v619_v37 = vunpack.c.3.s8 %v250_v20  ;;  %v1240_v19 = vpop.f32.mrf.mxu1  ;;  %v1253_v28 = vpop.f32.mrf.mxu2 }
  0xe8   :  { %1503 = vmatpush.bf16.msrb.mxu2 %v1206_v30  ;;  %v986_v39 = vcvt.s32.f32 %v602_v32  ;;  %v987_v40 = vcvt.s32.f32 %v603_v33  ;;  %v634_v41 = vunpack.c.2.s8 %v254_v29  ;;  %v635_v42 = vunpack.c.3.s8 %v254_v29  ;;  %v1266_v33 = vpop.f32.mrf.mxu3 }
  0xe9   :  { %1516 = vmatpush.bf16.msrb.mxu3 %v1214_v34  ;;  %v1189_v43 = vpack.c.bf16 %v971_v35, %v970_v31  ;;  %v1002_v53 = vcvt.s32.f32 %v618_v36  ;;  %v1003_v44 = vcvt.s32.f32 %v619_v37  ;;  %v584_v45 = vunpack.c.0.s8 %v242_v16 }
  0xea   :  { %v1197_v46 = vpack.c.bf16 %v987_v40, %v986_v39  ;;  %v1018_v47 = vcvt.s32.f32 %v634_v41  ;;  %v1019_v58 = vcvt.s32.f32 %v635_v42  ;;  %v585_v48 = vunpack.c.1.s8 %v242_v16 }
  0xeb   :  { %1478 = vmatpush.bf16.msrb.mxu0 %v1189_v43  ;;  %v1205_v51 = vpack.c.bf16 %v1003_v44, %v1002_v53  ;;  %v968_v52 = vcvt.s32.f32 %v584_v45  ;;  %v600_v59 = vunpack.c.0.s8 %v246_v13  ;;  %v601_v57 = vunpack.c.1.s8 %v246_v13  ;;  %v240_v43 = vld [vmem:[#allocation5 + $0x280] sm:$0xff] }
  0xec   :  { %1491 = vmatpush.bf16.msrb.mxu1 %v1197_v46  ;;  %v1213_v56 = vpack.c.bf16 %v1019_v58, %v1018_v47  ;;  %v969_v60 = vcvt.s32.f32 %v585_v48  ;;  %v616_v61 = vunpack.c.0.s8 %v250_v20  ;;  %v617_v0 = vunpack.c.1.s8 %v250_v20 }
  0xed   :  { %1504 = vmatpush.bf16.msrb.mxu2 %v1205_v51  ;;  %v984_v1 = vcvt.s32.f32 %v600_v59  ;;  %v985_v2 = vcvt.s32.f32 %v601_v57  ;;  %v632_v3 = vunpack.c.0.s8 %v254_v29  ;;  %v633_v7 = vunpack.c.1.s8 %v254_v29  ;;  %v1890_v59 = vpop.f32.mrf.mxu0 }
  0xee   :  { %1517 = vmatpush.bf16.msrb.mxu3 %v1213_v56  ;;  %v1188_v10 = vpack.c.bf16 %v969_v60, %v968_v52  ;;  %v1000_v11 = vcvt.s32.f32 %v616_v61  ;;  %v1001_v12 = vcvt.s32.f32 %v617_v0  ;;  %v582_v14 = vunpack.c.2.s8 %v241_v54  ;;  %v244_v52 = vld [vmem:[#allocation5 + $0x2a0] sm:$0xff] }
  0xef   :  { %v1196_v15 = vpack.c.bf16 %v985_v2, %v984_v1  ;;  %v1016_v16 = vcvt.s32.f32 %v632_v3  ;;  %v1017_v17 = vcvt.s32.f32 %v633_v7  ;;  %v583_v21 = vunpack.c.3.s8 %v241_v54  ;;  %v248_v61 = vld [vmem:[#allocation5 + $0x2c0] sm:$0xff] }
  0xf0   :  { %1479 = vmatpush.bf16.msrb.mxu0 %v1188_v10  ;;  %v1204_v6 = vpack.c.bf16 %v1001_v12, %v1000_v11  ;;  %v966_v23 = vcvt.s32.f32 %v582_v14  ;;  %v598_v5 = vunpack.c.2.s8 %v245_v8  ;;  %v599_v24 = vunpack.c.3.s8 %v245_v8  ;;  %v252_v7 = vld [vmem:[#allocation5 + $0x2e0] sm:$0xff]  ;;  %v1892_v14 = vpop.f32.mrf.mxu1 }
  0xf1   :  { %1492 = vmatpush.bf16.msrb.mxu1 %v1196_v15  ;;  %v1212_v13 = vpack.c.bf16 %v1017_v17, %v1016_v16  ;;  %v967_v4 = vcvt.s32.f32 %v583_v21  ;;  %v614_v25 = vunpack.c.2.s8 %v249_v62  ;;  %v615_v26 = vunpack.c.3.s8 %v249_v62 }
  0xf2   :  { %1505 = vmatpush.bf16.msrb.mxu2 %v1204_v6  ;;  %v982_v18 = vcvt.s32.f32 %v598_v5  ;;  %v983_v20 = vcvt.s32.f32 %v599_v24  ;;  %v630_v27 = vunpack.c.2.s8 %v253_v22  ;;  %v631_v63 = vunpack.c.3.s8 %v253_v22 }
  0xf3   :  { %1518 = vmatpush.bf16.msrb.mxu3 %v1212_v13  ;;  %v1187_v29 = vpack.c.bf16 %v967_v4, %v966_v23  ;;  %v998_v30 = vcvt.s32.f32 %v614_v25  ;;  %v999_v31 = vcvt.s32.f32 %v615_v26  ;;  %v580_v32 = vunpack.c.0.s8 %v241_v54 }
  0xf4   :  { %v1195_v34 = vpack.c.bf16 %v983_v20, %v982_v18  ;;  %v1014_v35 = vcvt.s32.f32 %v630_v27  ;;  %v1015_v36 = vcvt.s32.f32 %v631_v63  ;;  %v581_v37 = vunpack.c.1.s8 %v241_v54 }
  0xf5   :  { %1480 = vmatpush.bf16.msrb.mxu0 %v1187_v29  ;;  %v1203_v39 = vpack.c.bf16 %v999_v31, %v998_v30  ;;  %v964_v40 = vcvt.s32.f32 %v580_v32  ;;  %v596_v41 = vunpack.c.0.s8 %v245_v8  ;;  %v597_v42 = vunpack.c.1.s8 %v245_v8  ;;  %v1279_v30 = vpop.f32.mrf.mxu0 }
  0xf6   :  { %1493 = vmatpush.bf16.msrb.mxu1 %v1195_v34  ;;  %v1211_v53 = vpack.c.bf16 %v1015_v36, %v1014_v35  ;;  %v965_v44 = vcvt.s32.f32 %v581_v37  ;;  %v612_v45 = vunpack.c.0.s8 %v249_v62  ;;  %v613_v46 = vunpack.c.1.s8 %v249_v62  ;;  %v1894_v62 = vpop.f32.mrf.mxu2  ;;  %v108_v35 = vld.sshfl [vmem:[#allocation1 + $0x20] sm:$0xff pattern:$0x73625140]  ;;  %v1549_v30 = vld [vmem:[#allocation7 + $0x50] sm:$0xff] }
  0xf7   :  { %1506 = vmatpush.bf16.msrb.mxu2 %v1203_v39  ;;  %v980_v47 = vcvt.s32.f32 %v596_v41  ;;  %v981_v58 = vcvt.s32.f32 %v597_v42  ;;  %v628_v48 = vunpack.c.0.s8 %v253_v22  ;;  %v629_v51 = vunpack.c.1.s8 %v253_v22  ;;  %v1896_v22 = vpop.f32.mrf.mxu3  ;;  %v109_v41 = vld.sshfl [vmem:[#allocation1 + $0x28] sm:$0xff pattern:$0x73625140] }
  0xf8   :  { %1519 = vmatpush.bf16.msrb.mxu3 %v1211_v53  ;;  %v1186_v57 = vpack.c.bf16 %v965_v44, %v964_v40  ;;  %v996_v54 = vcvt.s32.f32 %v612_v45  ;;  %v997_v56 = vcvt.s32.f32 %v613_v46  ;;  %v578_v60 = vunpack.c.2.s8 %v240_v43  ;;  %v110_v44 = vld.sshfl [vmem:[#allocation1 + $0x30] sm:$0xff pattern:$0x73625140]  ;;  %v1292_v45 = vpop.f32.mrf.mxu1 }
  0xf9   :  { %v1194_v0 = vpack.c.bf16 %v981_v58, %v980_v47  ;;  %v1012_v1 = vcvt.s32.f32 %v628_v48  ;;  %v1013_v2 = vcvt.s32.f32 %v629_v51  ;;  %v579_v3 = vunpack.c.3.s8 %v240_v43  ;;  %v1542_v45 = vld [vmem:[#allocation7 + $0x18] sm:$0xff] }
  0xfa   :  { %1481 = vmatpush.bf16.msrb.mxu0 %v1186_v57  ;;  %v1202_v8 = vpack.c.bf16 %v997_v56, %v996_v54  ;;  %v962_v10 = vcvt.s32.f32 %v578_v60  ;;  %v594_v11 = vunpack.c.2.s8 %v244_v52  ;;  %v595_v12 = vunpack.c.3.s8 %v244_v52 }
  0xfb   :  { %1494 = vmatpush.bf16.msrb.mxu1 %v1194_v0  ;;  %v1210_v15 = vpack.c.bf16 %v1013_v2, %v1012_v1  ;;  %v963_v16 = vcvt.s32.f32 %v579_v3  ;;  %v610_v17 = vunpack.c.2.s8 %v248_v61  ;;  %v611_v21 = vunpack.c.3.s8 %v248_v61 }
  0xfc   :  { %1507 = vmatpush.bf16.msrb.mxu2 %v1202_v8  ;;  %v978_v9 = vcvt.s32.f32 %v594_v11  ;;  %v979_v6 = vcvt.s32.f32 %v595_v12  ;;  %v626_v23 = vunpack.c.2.s8 %v252_v7  ;;  %v627_v5 = vunpack.c.3.s8 %v252_v7 }
  0xfd   :  { %1520 = vmatpush.bf16.msrb.mxu3 %v1210_v15  ;;  %v1185_v24 = vpack.c.bf16 %v963_v16, %v962_v10  ;;  %v994_v13 = vcvt.s32.f32 %v610_v17  ;;  %v995_v4 = vcvt.s32.f32 %v611_v21  ;;  %v576_v25 = vunpack.c.0.s8 %v240_v43 }
  0xfe   :  { %v1193_v26 = vpack.c.bf16 %v979_v6, %v978_v9  ;;  %v1010_v18 = vcvt.s32.f32 %v626_v23  ;;  %v1011_v20 = vcvt.s32.f32 %v627_v5  ;;  %v577_v27 = vunpack.c.1.s8 %v240_v43  ;;  %v1305_v46 = vpop.f32.mrf.mxu2 }
  0xff   :  { %1482 = vmatpush.bf16.msrb.mxu0 %v1185_v24  ;;  %v1201_v63 = vpack.c.bf16 %v995_v4, %v994_v13  ;;  %v960_v19 = vcvt.s32.f32 %v576_v25  ;;  %v592_v28 = vunpack.c.0.s8 %v244_v52  ;;  %v593_v29 = vunpack.c.1.s8 %v244_v52  ;;  %v111_v52 = vld.sshfl [vmem:[#allocation1 + $0x38] sm:$0xff pattern:$0x73625140]  ;;  %v1318_v57 = vpop.f32.mrf.mxu3  ;;  %v1541_v46 = vld [vmem:[#allocation7 + $0x10] sm:$0xff] }
 0x100   :  { %1495 = vmatpush.bf16.msrb.mxu1 %v1193_v26  ;;  %v1209_v31 = vpack.c.bf16 %v1011_v20, %v1010_v18  ;;  %v961_v32 = vcvt.s32.f32 %v577_v27  ;;  %v608_v33 = vunpack.c.0.s8 %v248_v61  ;;  %v609_v34 = vunpack.c.1.s8 %v248_v61  ;;  %v1554_v27 = vld [vmem:[#allocation7 + $0x78] sm:$0xff] }
 0x101   :  { %1508 = vmatpush.bf16.msrb.mxu2 %v1201_v63  ;;  %v976_v36 = vcvt.s32.f32 %v592_v28  ;;  %v977_v37 = vcvt.s32.f32 %v593_v29  ;;  %v624_v39 = vunpack.c.0.s8 %v252_v7  ;;  %v625_v40 = vunpack.c.1.s8 %v252_v7  ;;  %v1553_v63 = vld [vmem:[#allocation7 + $0x70] sm:$0xff]  ;;  %v1551_v28 = vld [vmem:[#allocation7 + $0x60] sm:$0xff]  ;;  %v1550_v29 = vld [vmem:[#allocation7 + $0x58] sm:$0xff] }
 0x102   :  { %1521 = vmatpush.bf16.msrb.mxu3 %v1209_v31  ;;  %v1184_v42 = vpack.c.bf16 %v961_v32, %v960_v19  ;;  %v992_v43 = vcvt.s32.f32 %v608_v33  ;;  %v993_v53 = vcvt.s32.f32 %v609_v34  ;;  %v156_v51 = vpack.c.bf16 %v108_v35, %v108_v35  ;;  %v1552_v19 = vld [vmem:[#allocation7 + $0x68] sm:$0xff] }
 0x103   :  { %v1192_v47 = vpack.c.bf16 %v977_v37, %v976_v36  ;;  %v1008_v58 = vcvt.s32.f32 %v624_v39  ;;  %v1009_v48 = vcvt.s32.f32 %v625_v40  ;;  %v157_v56 = vpack.c.bf16 %v109_v41, %v109_v41  ;;  %v1548_v31 = vld [vmem:[#allocation7 + $0x48] sm:$0xff]  ;;  %v1547_v36 = vld [vmem:[#allocation7 + $0x40] sm:$0xff]  ;;  %v1546_v40 = vld [vmem:[#allocation7 + $0x38] sm:$0xff] }
 0x104   :  { %1483 = vmatpush.bf16.msrb.mxu0 %v1184_v42  ;;  %v1200_v54 = vpack.c.bf16 %v993_v53, %v992_v43  ;;  %v1239_v60 = vadd.f32 %v1884_v49, %v1882_v38  ;;  %v158_v0 = vpack.c.bf16 %v110_v44, %v110_v44  ;;  %v159_v1 = vpack.c.bf16 %v111_v52, %v111_v52  ;;  %v1545_v41 = vld [vmem:[#allocation7 + $0x30] sm:$0xff]  ;;  %v1544_v42 = vld [vmem:[#allocation7 + $0x28] sm:$0xff]  ;;  %v1543_v53 = vld [vmem:[#allocation7 + $0x20] sm:$0xff] }
 0x105   :  { %1496 = vmatpush.bf16.msrb.mxu1 %v1192_v47  ;;  %v1208_v61 = vpack.c.bf16 %v1009_v48, %v1008_v58  ;;  %v1540_v47 = vld [vmem:[#allocation7 + $0x8] sm:$0xff]  ;;  %v1539_v58 = vld [vmem:[#allocation7] sm:$0xff] }
 0x106   :  { %1509 = vmatpush.bf16.msrb.mxu2 %v1200_v54  ;;  %v1252_v2 = vadd.f32 %v1886_v50, %v1239_v60 }
 0x107   :  { %1522 = vmatpush.bf16.msrb.mxu3 %v1208_v61  ;;  %1484 = vmatmul.bf16.vlgmr.msrb.gmra.mxu0 %v156_v51 }
 0x108   :  { %1497 = vmatmul.bf16.vlgmr.msrb.gmra.mxu1 %v157_v56  ;;  %v1265_v3 = vadd.f32 %v1888_v55, %v1252_v2  ;;  %1559 = vmatpush.msra.mxu0 %v1554_v27 }
 0x109   :  { %1510 = vmatmul.bf16.vlgmr.msrb.gmra.mxu2 %v158_v0 }
 0x10a   :  { %1523 = vmatmul.bf16.vlgmr.msrb.gmra.mxu3 %v159_v1  ;;  %v1278_v7 = vadd.f32 %v1890_v59, %v1265_v3  ;;  %1560 = vmatpush.msra.mxu0 %v1553_v63 }
 0x10c   :  { %v1291_v8 = vadd.f32 %v1892_v14, %v1278_v7  ;;  %v1329_v10 = vpop.f32.mrf.mxu0  ;;  %1561 = vmatpush.msra.mxu0 %v1552_v19  ;;  %v1629_v7 = vld [vmem:[%s1920_s2] ss:$0 sm:$0xff]  ;;  %s1743_s2 = smov [#allocation8]  }
 0x10d   :  { %v1342_v38 = vpop.f32.mrf.mxu1 }
 0x10e   :  { %v1304_v49 = vadd.f32 %v1894_v62, %v1291_v8  ;;  %1562 = vmatpush.msra.mxu0 %v1551_v28 }
 0x110   :  { %v1317_v11 = vadd.f32 %v1896_v22, %v1304_v49  ;;  %1563 = vmatpush.msra.mxu0 %v1550_v29 }
 0x112   :  { %v1330_v12 = vadd.f32 %v1329_v10, %v1317_v11  ;;  %1564 = vmatpush.msra.mxu0 %v1549_v30 }
 0x114   :  { %v1343_v15 = vadd.f32 %v1342_v38, %v1330_v12  ;;  %v1355_v50 = vpop.f32.mrf.mxu2  ;;  %v1331_v16 = vpop.f32.mrf.mxu0  ;;  %1565 = vmatpush.msra.mxu0 %v1548_v31  ;;  %v1630_v38 = vld [vmem:[%s1921_s3] ss:$0 sm:$0xff]  ;;  %s1610_s3 = sshll.u32 %s1743_s2, 4  ;;  %s1611_s3 = int_to_ptr.vmem [resolvable:$true] %s1610_s3 }
 0x115   :  { %v1368_v17 = vpop.f32.mrf.mxu3  ;;  %v1344_v21 = vpop.f32.mrf.mxu1  ;;  %v1631_v16 = vld [vmem:[%s1923_s5] ss:$0 sm:$0xff] }
 0x116   :  { %v1356_v9 = vadd.f32 %v1355_v50, %v1343_v15  ;;  %1566 = vmatpush.msra.mxu0 %v1547_v36 }
 0x118   :  { %v1369_v55 = vadd.f32 %v1368_v17, %v1356_v9  ;;  %1567 = vmatpush.msra.mxu0 %v1546_v40 }
 0x11a   :  { %1568 = vmatpush.msra.mxu0 %v1545_v41 }
 0x11c   :  { %v1357_v6 = vpop.f32.mrf.mxu2  ;;  %1569 = vmatpush.msra.mxu0 %v1544_v42 }
 0x11d   :  { %v1370_v23 = vpop.f32.mrf.mxu3 }
 0x11e   :  { %1570 = vmatpush.msra.mxu0 %v1543_v53 }
 0x120   :  { %1571 = vmatpush.msra.mxu0 %v1542_v45 }
 0x122   :  { %1572 = vmatpush.msra.mxu0 %v1541_v46 }
 0x124   :  { %1573 = vmatpush.msra.mxu0 %v1540_v47 }
 0x126   :  { %1574 = vmatpush.msra.mxu0 %v1539_v58 }
 0x135   :  { %v1381_v5 = vpop.f32.mrf.mxu0 }
 0x136   :  { %v1382_v59 = vadd.f32 %v1381_v5, %v1369_v55  ;;  %v1394_v24 = vpop.f32.mrf.mxu1 }
 0x138   :  { %v1395_v14 = vadd.f32 %v1394_v24, %v1382_v59 }
 0x13d   :  { %v1407_v13 = vpop.f32.mrf.mxu2  ;;  %v1383_v4 = vpop.f32.mrf.mxu0 }
 0x13e   :  { %v1408_v25 = vadd.f32 %v1407_v13, %v1395_v14  ;;  %v1420_v62 = vpop.f32.mrf.mxu3  ;;  %v1396_v26 = vpop.f32.mrf.mxu1 }
 0x140   :  { %v1421_v22 = vadd.f32 %v1420_v62, %v1408_v25 }
 0x145   :  { %v1409_v18 = vpop.f32.mrf.mxu2 }
 0x146   :  { %v1422_v20 = vpop.f32.mrf.mxu3 }
 0x15e   :  { %v1433_v32 = vpop.f32.mrf.mxu0 }
 0x15f   :  { %v1446_v33 = vpop.f32.mrf.mxu1  ;;  %v1434_v48 = vadd.f32 %v1433_v32, %v1421_v22 }
 0x161   :  { %v1447_v51 = vadd.f32 %v1446_v33, %v1434_v48 }
 0x166   :  { %v1459_v34 = vpop.f32.mrf.mxu2  ;;  %v1435_v35 = vpop.f32.mrf.mxu0 }
 0x167   :  { %v1472_v37 = vpop.f32.mrf.mxu3  ;;  %v1448_v39 = vpop.f32.mrf.mxu1  ;;  %v1460_v52 = vadd.f32 %v1459_v34, %v1447_v51 }
 0x169   :  { %v1473_v54 = vadd.f32 %v1472_v37, %v1460_v52 }
 0x16e   :  { %v1461_v43 = vpop.f32.mrf.mxu2 }
 0x16f   :  { %v1474_v44 = vpop.f32.mrf.mxu3 }
 0x184   :  { %v1485_v57 = vpop.f32.mrf.mxu0 }
 0x185   :  { %v1498_v56 = vpop.f32.mrf.mxu1  ;;  %v1486_v60 = vadd.f32 %v1485_v57, %v1473_v54 }
 0x187   :  { %v1499_v61 = vadd.f32 %v1498_v56, %v1486_v60 }
 0x18c   :  { %v1511_v0 = vpop.f32.mrf.mxu2  ;;  %v1487_v1 = vpop.f32.mrf.mxu0 }
 0x18d   :  { %v1512_v2 = vadd.f32 %v1511_v0, %v1499_v61  ;;  %v1524_v3 = vpop.f32.mrf.mxu3  ;;  %v1500_v8 = vpop.f32.mrf.mxu1 }
 0x18f   :  { %v1525_v10 = vadd.f32 %v1524_v3, %v1512_v2 }
 0x191   :  { %v1532_v49 = vmul.f32 %v1629_v7, %v1525_v10 }
 0x193   :  { %v1537_v11 = vadd.f32 %v1630_v38, %v1532_v49 }
 0x194   :  { %v1513_v12 = vpop.f32.mrf.mxu2 }
 0x195   :  { %v1538_v15 = vmax.f32 %v1537_v11, 0.0  ;;  %v1526_v50 = vpop.f32.mrf.mxu3 }
 0x197   :  { %1575 = vmatmul.f32.vlgmr.msra.gmra.mxu0 %v1538_v15 }
 0x214   :  { %v1576_v17 = vpop.f32.mrf.mxu0 }
 0x215   :  { %v1577_v21 = vadd.f32 %v1631_v16, %v1576_v17 }
 0x217   :  { %v1580_v9 = vsel %vm1579_vm0, %v1577_v21, -inf }
 0x218   :  { %1581 = vmax.xlane.f32.xlu0 %v1580_v9 }
 0x28b   :  { %v1582_v55 = vpop.xlane.xlu0 %1581 }
 0x28c   :  { %v1583_v6 = vsub.f32 %v1577_v21, %v1582_v55 }
 0x28e   :  { %v1584_v23 = vmul.f32 1.442695, %v1583_v6 }
 0x290   :  { %1632 = vpow2.f32 %v1584_v23 }
 0x296   :  { %v1633_v5 = vpop.eup %1632 }
 0x297   :  { %v1586_v59 = vsel %vm1579_vm0, %v1633_v5, 0.0 }
 0x298   :  { %1587 = vadd.xlane.f32.xlu0 %v1586_v59 }
 0x30b   :  { %v1588_v24 = vpop.xlane.xlu0 %1587 }
 0x30c   :  { %1634 = vrcp.f32 %v1588_v24  ;;  %v1600_v25 = vand.u32 2147483648, %v1588_v24  ;;  %v1598_v26 = vand.u32 2147483647, %v1588_v24  ;;  %vm1594_vm2 = vweird.f32 %v1588_v24 }
 0x30e   :  { %v1601_v18 = vor.u32 1.1754944e-38, %v1600_v25  ;;  %vm1599_vm4 = vcmp.eq.f32.partialorder %v1598_v26, 8.507059e+37 }
 0x312   :  { %v1635_v14 = vpop.eup %1634 }
 0x313   :  { %v1590_v13 = vmul.f32 %v1635_v14, %v1588_v24  ;;  %vm1595_vm1 = vweird.f32 %v1635_v14 }
 0x314   :  { %vm1596_vm3 = vmor %vm1594_vm2, %vm1595_vm1 }
 0x315   :  { %v1591_v4 = vsub.f32 1.0, %v1590_v13 }
 0x317   :  { %v1592_v62 = vmul.f32 %v1635_v14, %v1591_v4 }
 0x319   :  { %v1593_v22 = vadd.f32 %v1635_v14, %v1592_v62 }
 0x31b   :  { %v1597_v20 = vsel %vm1596_vm3, %v1635_v14, %v1593_v22 }
 0x31c   :  { %v1602_v27 = vsel %vm1599_vm4, %v1601_v18, %v1597_v20 }
 0x31d   :  { %v1603_v63 = vmul.f32 %v1633_v5, %v1602_v27 }
 0x31f   :  { %1604 = vst [vmem:[#allocation8] sm:$0x3] %v1603_v63 }
 0x320   :  { %1615 = dma.vmem_to_hbm [thread:$0]  %s1611_s3, 32, %s1613_s18, [#allocation4]  }
 0x321   :  { %1736 = dma.done.wait [#allocation4], 32  }
 0x322   :  { %1737 = vsyncadd [#allocation4], 4294967264 }
 0x323   :  { %1620 = vsyncpa [#allocation3], 1 }
 0x324   :  { %1621 = vsyncpa [#allocation6], 1 }
 0x325   :  { %1622 = vsyncpa [#allocation4], 1 }

</bundles_post_ra>
